<compile_context>
chip_gen: v7x
topology: tpu7x:2x2x1
jax: 0.10.0
libtpu: 0.0.40
codegen_flags: <defaults>
</compile_context>

<pallas_src>
import jax
import jax.numpy as jnp
from jax.experimental import pallas as pl
from jax.experimental.pallas import tpu as pltpu

IN_DIM = 28 * 28          # 784
H1_DIM = 512
H2_DIM = 256
TILE_B = 128              # batch rows per grid step


def _leaky_relu(x, slope=0.2):
    return jnp.where(x > 0, x, slope * x)


def discriminator_kernel(x_ref, w1_ref, b1_ref, w2_ref, b2_ref, w3_ref, b3_ref,
                         o_ref):
    """One batch tile: two bf16 MXU matmuls + VPU final layer + sigmoid."""
    # Layer 1: (tile_B, 784) @ (784, 512) on the MXU, bf16 in / f32 acc.
    x = x_ref[...].astype(jnp.bfloat16)
    h1 = jnp.dot(x, w1_ref[...], preferred_element_type=jnp.float32)
    h1 = _leaky_relu(h1 + b1_ref[...])                       # f32 VPU math

    # Layer 2: (tile_B, 512) @ (512, 256).
    h2 = jnp.dot(h1.astype(jnp.bfloat16), w2_ref[...],
                 preferred_element_type=jnp.float32)
    h2 = _leaky_relu(h2 + b2_ref[...])                       # f32 VPU math

    # Layer 3: 1-column RHS -> skip the MXU, use VPU multiply + XLU reduce.
    logits = jnp.sum(h2 * w3_ref[...], axis=-1, keepdims=True) + b3_ref[...]

    # Sigmoid: EUP exp + EUP approximate reciprocal (free slots).
    o_ref[...] = pl.reciprocal(1.0 + jnp.exp(-logits), approx=True)


def discriminator_forward(x_nchw, params, *, tile_b=TILE_B):
    """x_nchw: (B, 1, 28, 28) float32 -> (B, 1) float32 probabilities."""
    w1, b1, w2, b2, w3_row, b3 = params
    B = x_nchw.shape[0]
    x2d = x_nchw.reshape(B, -1).astype(jnp.float32)           # nn.Flatten()

    # Pad the batch up to a multiple of the tile so the grid is exact.
    b_pad = pl.cdiv(B, tile_b) * tile_b
    if b_pad != B:
        x2d = jnp.pad(x2d, ((0, b_pad - B), (0, 0)))

    grid = (b_pad // tile_b,)
    const = lambda i: (0, 0)                                  # weights resident

    out = pl.pallas_call(
        discriminator_kernel,
        out_shape=jax.ShapeDtypeStruct((b_pad, 1), jnp.float32),
        grid_spec=pltpu.PrefetchScalarGridSpec(
            num_scalar_prefetch=0,
            grid=grid,
            in_specs=[
                pl.BlockSpec((tile_b, IN_DIM), lambda i: (i, 0)),   # x tile
                pl.BlockSpec((IN_DIM, H1_DIM), const),              # w1 (bf16)
                pl.BlockSpec((1, H1_DIM), const),                   # b1 (f32)
                pl.BlockSpec((H1_DIM, H2_DIM), const),              # w2 (bf16)
                pl.BlockSpec((1, H2_DIM), const),                   # b2 (f32)
                pl.BlockSpec((1, H2_DIM), const),                   # w3 row (f32)
                pl.BlockSpec((1, 1), const),                        # b3 (f32)
            ],
            out_specs=pl.BlockSpec((tile_b, 1), lambda i: (i, 0)),
        ),
        compiler_params=pltpu.CompilerParams(
            dimension_semantics=("parallel",)),                # v7x: 2 TCs
    )(x2d, w1, b1, w2, b2, w3_row, b3)

    return out[:B]


def init_params(key):
    """Deterministic synthetic weights matching the nn.Linear layers.

    w1/w2 stored as (in, out) bf16 (MXU operands); w3 stored as an f32 row
    (1, 256) for the VPU final layer; biases are f32.
    """
    ks = jax.random.split(key, 6)

    def lin(kw, kb, fan_in, fan_out):
        bound = 1.0 / jnp.sqrt(fan_in)
        w = jax.random.uniform(kw, (fan_in, fan_out), jnp.float32, -bound, bound)
        b = jax.random.uniform(kb, (1, fan_out), jnp.float32, -bound, bound)
        return w, b

    w1, b1 = lin(ks[0], ks[1], IN_DIM, H1_DIM)
    w2, b2 = lin(ks[2], ks[3], H1_DIM, H2_DIM)
    w3, b3 = lin(ks[4], ks[5], H2_DIM, 1)
    return (w1.astype(jnp.bfloat16), b1,
            w2.astype(jnp.bfloat16), b2,
            w3.reshape(1, H2_DIM), b3.reshape(1, 1))


def _reference(x_nchw, params):
    """Pure-JAX reference with the same bf16 operand casts as the kernel."""
    w1, b1, w2, b2, w3_row, b3 = params
    x = x_nchw.reshape(x_nchw.shape[0], -1).astype(jnp.float32)
    h = jnp.dot(x.astype(jnp.bfloat16), w1, preferred_element_type=jnp.float32)
    h = _leaky_relu(h + b1)
    h = jnp.dot(h.astype(jnp.bfloat16), w2, preferred_element_type=jnp.float32)
    h = _leaky_relu(h + b2)
    logits = jnp.sum(h * w3_row, axis=-1, keepdims=True) + b3
    return jax.nn.sigmoid(logits)


if __name__ == "__main__":
    key = jax.random.PRNGKey(0)
    k_x, k_p = jax.random.split(key)
    params = init_params(k_p)

    # Meaningful batch: 256 rows -> 2 grid tiles of 128 (MXU / DMA amortized).
    x = jax.random.normal(k_x, (256, 1, 28, 28), dtype=jnp.float32)
    out = jax.block_until_ready(discriminator_forward(x, params))
    ref = _reference(x, params)
    assert out.shape == (256, 1)
    assert jnp.allclose(out, ref, atol=2e-3, rtol=2e-3)

    # Ragged tiny batch (B=2) exercises the padding path.
    x_small = jax.random.normal(k_x, (2, 1, 28, 28), dtype=jnp.float32)
    out_small = jax.block_until_ready(discriminator_forward(x_small, params))
    ref_small = _reference(x_small, params)
    assert out_small.shape == (2, 1)
    assert jnp.allclose(out_small, ref_small, atol=2e-3, rtol=2e-3)

    print("KERNEL_OK")
</pallas_src>

<mosaic_0001>
module attributes {stable_mosaic.version = 11 : i64} {
  func.func @discriminator_kernel(%arg0: i32, %arg1: memref<128x784xf32, #tpu.memory_space<vmem>>, %arg2: memref<784x512xbf16, #tpu.memory_space<vmem>>, %arg3: memref<1x512xf32, #tpu.memory_space<vmem>>, %arg4: memref<512x256xbf16, #tpu.memory_space<vmem>>, %arg5: memref<1x256xf32, #tpu.memory_space<vmem>>, %arg6: memref<1x256xf32, #tpu.memory_space<vmem>>, %arg7: memref<1x1xf32, #tpu.memory_space<vmem>>, %arg8: memref<128x1xf32, #tpu.memory_space<vmem>>) attributes {dimension_semantics = [#tpu.dimension_semantics<parallel>], iteration_bounds = array<i64: 2>, scalar_prefetch = 0 : i64, scratch_operands = 0 : i64, tpu.core_type = #tpu.core_type<tc>, window_params = [{transform_indices = @transform_0, window_bounds = array<i64: 128, 784>}, {pipeline_mode = #tpu.pipeline_mode<synchronous>, transform_indices = @transform_1, window_bounds = array<i64: 784, 512>}, {pipeline_mode = #tpu.pipeline_mode<synchronous>, transform_indices = @transform_2, window_bounds = array<i64: 1, 512>}, {pipeline_mode = #tpu.pipeline_mode<synchronous>, transform_indices = @transform_3, window_bounds = array<i64: 512, 256>}, {pipeline_mode = #tpu.pipeline_mode<synchronous>, transform_indices = @transform_4, window_bounds = array<i64: 1, 256>}, {pipeline_mode = #tpu.pipeline_mode<synchronous>, transform_indices = @transform_5, window_bounds = array<i64: 1, 256>}, {pipeline_mode = #tpu.pipeline_mode<synchronous>, transform_indices = @transform_6, window_bounds = array<i64: 1, 1>}, {transform_indices = @transform_7, window_bounds = array<i64: 128, 1>}]} {
    %c0 = arith.constant 0 : index
    %c0_0 = arith.constant 0 : index
    %0 = vector.load %arg1[%c0, %c0_0] : memref<128x784xf32, #tpu.memory_space<vmem>>, vector<128x784xf32>
    %1 = arith.truncf %0 : vector<128x784xf32> to vector<128x784xbf16>
    %c0_1 = arith.constant 0 : index
    %c0_2 = arith.constant 0 : index
    %2 = vector.load %arg2[%c0_1, %c0_2] : memref<784x512xbf16, #tpu.memory_space<vmem>>, vector<784x512xbf16>
    %cst = arith.constant dense<0.000000e+00> : vector<128x512xf32>
    %3 = tpu.matmul %1, %2, %cst {dimension_numbers = #tpu.dot_dimension_numbers<[1], [0], [0], [1], [0, 0, 1, 1], [], []>} : vector<128x784xbf16>, vector<784x512xbf16>, vector<128x512xf32> -> vector<128x512xf32>
    %c0_3 = arith.constant 0 : index
    %c0_4 = arith.constant 0 : index
    %4 = vector.load %arg3[%c0_3, %c0_4] : memref<1x512xf32, #tpu.memory_space<vmem>>, vector<1x512xf32>
    %5 = vector.broadcast %4 : vector<1x512xf32> to vector<128x512xf32>
    %6 = arith.addf %3, %5 : vector<128x512xf32>
    %cst_5 = arith.constant 0.000000e+00 : f32
    %7 = vector.broadcast %cst_5 : f32 to vector<128x512xf32>
    %8 = arith.cmpf ogt, %6, %7 : vector<128x512xf32>
    %cst_6 = arith.constant 2.000000e-01 : f32
    %9 = vector.broadcast %cst_6 : f32 to vector<128x512xf32>
    %10 = arith.mulf %9, %6 : vector<128x512xf32>
    %11 = arith.select %8, %6, %10 : vector<128x512xi1>, vector<128x512xf32>
    %12 = arith.truncf %11 : vector<128x512xf32> to vector<128x512xbf16>
    %c0_7 = arith.constant 0 : index
    %c0_8 = arith.constant 0 : index
    %13 = vector.load %arg4[%c0_7, %c0_8] : memref<512x256xbf16, #tpu.memory_space<vmem>>, vector<512x256xbf16>
    %cst_9 = arith.constant dense<0.000000e+00> : vector<128x256xf32>
    %14 = tpu.matmul %12, %13, %cst_9 {dimension_numbers = #tpu.dot_dimension_numbers<[1], [0], [0], [1], [0, 0, 1, 1], [], []>} : vector<128x512xbf16>, vector<512x256xbf16>, vector<128x256xf32> -> vector<128x256xf32>
    %c0_10 = arith.constant 0 : index
    %c0_11 = arith.constant 0 : index
    %15 = vector.load %arg5[%c0_10, %c0_11] : memref<1x256xf32, #tpu.memory_space<vmem>>, vector<1x256xf32>
    %16 = vector.broadcast %15 : vector<1x256xf32> to vector<128x256xf32>
    %17 = arith.addf %14, %16 : vector<128x256xf32>
    %cst_12 = arith.constant 0.000000e+00 : f32
    %18 = vector.broadcast %cst_12 : f32 to vector<128x256xf32>
    %19 = arith.cmpf ogt, %17, %18 : vector<128x256xf32>
    %cst_13 = arith.constant 2.000000e-01 : f32
    %20 = vector.broadcast %cst_13 : f32 to vector<128x256xf32>
    %21 = arith.mulf %20, %17 : vector<128x256xf32>
    %22 = arith.select %19, %17, %21 : vector<128x256xi1>, vector<128x256xf32>
    %c0_14 = arith.constant 0 : index
    %c0_15 = arith.constant 0 : index
    %23 = vector.load %arg6[%c0_14, %c0_15] : memref<1x256xf32, #tpu.memory_space<vmem>>, vector<1x256xf32>
    %24 = vector.broadcast %23 : vector<1x256xf32> to vector<128x256xf32>
    %25 = arith.mulf %22, %24 : vector<128x256xf32>
    %cst_16 = arith.constant dense<0.000000e+00> : vector<128xf32>
    %26 = vector.multi_reduction <add>, %25, %cst_16 [1] : vector<128x256xf32> to vector<128xf32>
    %27 = vector.shape_cast %26 : vector<128xf32> to vector<128x1xf32>
    %c0_17 = arith.constant 0 : index
    %c0_18 = arith.constant 0 : index
    %28 = vector.load %arg7[%c0_17, %c0_18] : memref<1x1xf32, #tpu.memory_space<vmem>>, vector<1x1xf32>
    %29 = vector.broadcast %28 : vector<1x1xf32> to vector<128x1xf32>
    %30 = arith.addf %27, %29 : vector<128x1xf32>
    %cst_19 = arith.constant 0.000000e+00 : f32
    %31 = vector.broadcast %cst_19 : f32 to vector<128x1xf32>
    %32 = arith.subf %31, %30 : vector<128x1xf32>
    %33 = math.exp %32 : vector<128x1xf32>
    %cst_20 = arith.constant 1.000000e+00 : f32
    %34 = vector.broadcast %cst_20 : f32 to vector<128x1xf32>
    %35 = arith.addf %34, %33 : vector<128x1xf32>
    %36 = tpu.reciprocal %35 {approx = true} : vector<128x1xf32> -> vector<128x1xf32>
    %c0_21 = arith.constant 0 : index
    %c0_22 = arith.constant 0 : index
    %37 = vector.load %arg8[%c0_21, %c0_22] : memref<128x1xf32, #tpu.memory_space<vmem>>, vector<128x1xf32>
    tpu.vector_store %arg8[%c0_21, %c0_22], %36 {strides = array<i32>} : memref<128x1xf32, #tpu.memory_space<vmem>>, vector<128x1xf32>,
    return
  }
  func.func @transform_0(%arg0: i32) -> (i32, i32) {
    %c0_i32 = arith.constant 0 : i32
    %c0_i32_0 = arith.constant 0 : i32
    return %arg0, %c0_i32 : i32, i32
  }
  func.func @transform_1(%arg0: i32) -> (i32, i32) {
    %c0_i32 = arith.constant 0 : i32
    %c0_i32_0 = arith.constant 0 : i32
    %c0_i32_1 = arith.constant 0 : i32
    return %c0_i32, %c0_i32_0 : i32, i32
  }
  func.func @transform_2(%arg0: i32) -> (i32, i32) {
    %c0_i32 = arith.constant 0 : i32
    %c0_i32_0 = arith.constant 0 : i32
    %c0_i32_1 = arith.constant 0 : i32
    return %c0_i32, %c0_i32_0 : i32, i32
  }
  func.func @transform_3(%arg0: i32) -> (i32, i32) {
    %c0_i32 = arith.constant 0 : i32
    %c0_i32_0 = arith.constant 0 : i32
    %c0_i32_1 = arith.constant 0 : i32
    return %c0_i32, %c0_i32_0 : i32, i32
  }
  func.func @transform_4(%arg0: i32) -> (i32, i32) {
    %c0_i32 = arith.constant 0 : i32
    %c0_i32_0 = arith.constant 0 : i32
    %c0_i32_1 = arith.constant 0 : i32
    return %c0_i32, %c0_i32_0 : i32, i32
  }
  func.func @transform_5(%arg0: i32) -> (i32, i32) {
    %c0_i32 = arith.constant 0 : i32
    %c0_i32_0 = arith.constant 0 : i32
    %c0_i32_1 = arith.constant 0 : i32
    return %c0_i32, %c0_i32_0 : i32, i32
  }
  func.func @transform_6(%arg0: i32) -> (i32, i32) {
    %c0_i32 = arith.constant 0 : i32
    %c0_i32_0 = arith.constant 0 : i32
    %c0_i32_1 = arith.constant 0 : i32
    return %c0_i32, %c0_i32_0 : i32, i32
  }
  func.func @transform_7(%arg0: i32) -> (i32, i32) {
    %c0_i32 = arith.constant 0 : i32
    %c0_i32_0 = arith.constant 0 : i32
    return %arg0, %c0_i32 : i32, i32
  }
}

</mosaic_0001>

<bundles_post_ra>
// kernel: tpu_custom_call.1
= control target key start
LH: loop header
LB: loop body
LE: loop exit
PB: predicated region body
PF: predicated region fallthrough
CT: control target
= control target key end

     0   :  { %s4917_s26 = smov 0   ;;  %s6413_s0 = inlined_call_operand.vmem [shape: f32[256,784], index: 0, kind: input, shape index: {}]   ;;  %s6414_s1 = inlined_call_operand.vmem [shape: bf16[784,512], index: 1, kind: input, shape index: {}]   ;;  %s6415_s2 = inlined_call_operand.vmem [shape: f32[1,512], index: 2, kind: input, shape index: {}]   ;;  %s6416_s3 = inlined_call_operand.vmem [shape: bf16[512,256], index: 3, kind: input, shape index: {}]   ;;  %s6417_s4 = inlined_call_operand.vmem [shape: f32[1,256], index: 4, kind: input, shape index: {}]   ;;  %s6418_s5 = inlined_call_operand.vmem [shape: f32[1,256], index: 5, kind: input, shape index: {}]   ;;  %s6419_s6 = inlined_call_operand.<no memory space> [shape: f32[1,1], index: 6, kind: input, shape index: {}]   ;;  %s6420_s7 = inlined_call_operand.vmem [shape: f32[256,1], index: 7, kind: output, shape index: {}]  }
   0x1   :  { %v12_v0 = vstv %s6419_s6 }
   0x2   :  { %13 = vst [vmem:[#allocation2] sm:$0x1] %v12_v0 }
   0x3 LB: > { %s3793_s27 = sadd.s32 4294967295, %s4871_s26   ;;  %p3797_p0 = scmp.ge.s32.totalorder %s4871_s26, 1  ;;  %s4871_s26 = sphi %s4917_s26, %s19_s26  }
   0x4   : > { %p241_p1 = scmp.lt.s32.totalorder %s4871_s26, 3 }
   0x6   : > { %p242_p2 = pnand %p3797_p0, %p241_p1 }
   0x7   : > { %v4411_v1 = vld [vmem:[%s6414_s1 + $0x4] ss:$16 sps:$4 sm:$0xff] (!%p242_p2)   ;;  %v4415_v3 = vld [vmem:[%s6414_s1] ss:$16 sps:$4 sm:$0xff] (!%p242_p2)   ;;  %s3798_s18 = sshll.u32 (!%p242_p2), %s3793_s27, 4  ;;  %vm1654_vm0 = vcmask (!%p242_p2), 130048  }
   0x8   : > { %245 = sbr.rel (%p242_p2) target bundleno = 1004 (0x3ec), region = 48  ;;  %v4413_v2 = vld [vmem:[%s6414_s1 + $0x204] ss:$16 sps:$4 sm:$0xff] (!%p242_p2)   ;;  %1679 = vmatprep.subr.bf16.mxu1 (!%p242_p2), %v4411_v1  ;;  %v4416_v4 = vld [vmem:[%s6414_s1 + $0x200] ss:$16 sps:$4 sm:$0xff] (!%p242_p2)   ;;  %p275_p3 = scmp.lt.s32.totalorder (!%p242_p2), %s3798_s18, 31 }
   0x9   : > { %1792 = vmatprep.subr.bf16.mxu0 (!%p242_p2), %v4413_v2  ;;  %v4417_v5 = vld [vmem:[%s6414_s1 + $0x24] ss:$16 sps:$4 sm:$0xff] (!%p242_p2)   ;;  %1680 = vmatpush1.bf16.msra.mxu1 (!%p242_p2), %v4415_v3  ;;  %v4421_v7 = vld [vmem:[%s6414_s1 + $0x20] ss:$16 sps:$4 sm:$0xff] (!%p242_p2)  }
   0xa   : > { %1793 = vmatpush1.bf16.msra.mxu0 (!%p242_p2), %v4416_v4  ;;  %v4419_v6 = vld [vmem:[%s6414_s1 + $0x224] ss:$16 sps:$4 sm:$0xff] (!%p242_p2)   ;;  %1681 = vmatprep.subr.bf16.mxu1 (!%p242_p2), %v4417_v5  ;;  %v4422_v8 = vld [vmem:[%s6414_s1 + $0x220] ss:$16 sps:$4 sm:$0xff] (!%p242_p2)  }
   0xb   : > { %1794 = vmatprep.subr.bf16.mxu0 (!%p242_p2), %v4419_v6  ;;  %v4423_v9 = vld [vmem:[%s6414_s1 + $0x44] ss:$16 sps:$4 sm:$0xff] (!%p242_p2)   ;;  %v4427_v11 = vld [vmem:[%s6414_s1 + $0x40] ss:$16 sps:$4 sm:$0xff] (!%p242_p2)  }
   0xc   : > { %v4425_v10 = vld [vmem:[%s6414_s1 + $0x244] ss:$16 sps:$4 sm:$0xff] (!%p242_p2)   ;;  %v4428_v12 = vld [vmem:[%s6414_s1 + $0x240] ss:$16 sps:$4 sm:$0xff] (!%p242_p2)  }
   0xd   : > { %1682 = vmatpush1.bf16.msra.mxu1 (!%p242_p2), %v4421_v7  ;;  %v4429_v13 = vld [vmem:[%s6414_s1 + $0x64] ss:$16 sps:$4 sm:$0xff] (!%p242_p2)   ;;  %v4433_v15 = vld [vmem:[%s6414_s1 + $0x60] ss:$16 sps:$4 sm:$0xff] (!%p242_p2)  }
   0xe   : > { %1795 = vmatpush1.bf16.msra.mxu0 (!%p242_p2), %v4422_v8  ;;  %1683 = vmatprep.subr.bf16.mxu1 (!%p242_p2), %v4423_v9  ;;  %v4431_v14 = vld [vmem:[%s6414_s1 + $0x264] ss:$16 sps:$4 sm:$0xff] (!%p242_p2)   ;;  %v4434_v16 = vld [vmem:[%s6414_s1 + $0x260] ss:$16 sps:$4 sm:$0xff] (!%p242_p2)  }
   0xf   : > { %1796 = vmatprep.subr.bf16.mxu0 %v4425_v10  ;;  %v4435_v17 = vld [vmem:[%s6414_s1 + $0x84] ss:$16 sps:$4 sm:$0xff]   ;;  %v4439_v19 = vld [vmem:[%s6414_s1 + $0x80] ss:$16 sps:$4 sm:$0xff]   ;;  %s6422_s18 = smov (!%p275_p3, %s3798_s18), 31 }
  0x10   : > { %v4437_v18 = vld [vmem:[%s6414_s1 + $0x284] ss:$16 sps:$4 sm:$0xff]   ;;  %v4440_v20 = vld [vmem:[%s6414_s1 + $0x280] ss:$16 sps:$4 sm:$0xff]   ;;  %s4401_s16 = smul.u32 56, %s6422_s18  ;;  %s3801_s21 = sshll.u32 %s6422_s18, 3 }
  0x11   : > { %1684 = vmatpush1.bf16.msra.mxu1 %v4427_v11  ;;  %v4441_v21 = vld [vmem:[%s6414_s1 + $0xa4] ss:$16 sps:$4 sm:$0xff]   ;;  %v4445_v23 = vld [vmem:[%s6414_s1 + $0xa0] ss:$16 sps:$4 sm:$0xff]   ;;  %s6368_s24 = scalar_lea.vmem %s6420_s7, %s3801_s21 }
  0x12   : > { %1797 = vmatpush1.bf16.msra.mxu0 %v4428_v12  ;;  %1685 = vmatprep.subr.bf16.mxu1 %v4429_v13  ;;  %v4443_v22 = vld [vmem:[%s6414_s1 + $0x2a4] ss:$16 sps:$4 sm:$0xff]   ;;  %v4446_v24 = vld [vmem:[%s6414_s1 + $0x2a0] ss:$16 sps:$4 sm:$0xff]   ;;  %s5065_s30 = scalar_lea.vmem %s6413_s0, %s4401_s16  ;;  %v4512_v12 = vld [vmem:[%s6414_s1 + $0xc] ss:$16 sps:$4 sm:$0xff]  }
  0x13   : > { %1798 = vmatprep.subr.bf16.mxu0 %v4431_v14  ;;  %v4447_v25 = vld [vmem:[%s6414_s1 + $0xc4] ss:$16 sps:$4 sm:$0xff]   ;;  %v4451_v27 = vld [vmem:[%s6414_s1 + $0xc0] ss:$16 sps:$4 sm:$0xff]   ;;  %v289_v47 = vld [vmem:[%s5065_s30 + $0x8] sm:$0xff] }
  0x14   : > { %v4449_v26 = vld [vmem:[%s6414_s1 + $0x2c4] ss:$16 sps:$4 sm:$0xff]   ;;  %v4452_v28 = vld [vmem:[%s6414_s1 + $0x2c0] ss:$16 sps:$4 sm:$0xff]   ;;  %v291_v49 = vld [vmem:[%s5065_s30 + $0x18] sm:$0xff] }
  0x15   : > { %1686 = vmatpush1.bf16.msra.mxu1 %v4433_v15  ;;  %v4453_v29 = vld [vmem:[%s6414_s1 + $0xe4] ss:$16 sps:$4 sm:$0xff]   ;;  %v4457_v31 = vld [vmem:[%s6414_s1 + $0xe0] ss:$16 sps:$4 sm:$0xff]   ;;  %v295_v8 = vld [vmem:[%s5065_s30 + $0x38] sm:$0xff] }
  0x16   : > { %1799 = vmatpush1.bf16.msra.mxu0 %v4434_v16  ;;  %1687 = vmatprep.subr.bf16.mxu1 %v4435_v17  ;;  %v4455_v30 = vld [vmem:[%s6414_s1 + $0x2e4] ss:$16 sps:$4 sm:$0xff]   ;;  %v4458_v32 = vld [vmem:[%s6414_s1 + $0x2e0] ss:$16 sps:$4 sm:$0xff]   ;;  %v297_v10 = vld [vmem:[%s5065_s30 + $0x48] sm:$0xff] }
  0x17   : > { %1800 = vmatprep.subr.bf16.mxu0 %v4437_v18  ;;  %v4459_v33 = vld [vmem:[%s6414_s1 + $0x104] ss:$16 sps:$4 sm:$0xff]   ;;  %v4463_v35 = vld [vmem:[%s6414_s1 + $0x100] ss:$16 sps:$4 sm:$0xff]   ;;  %v4510_v14 = vld [vmem:[%s6414_s1 + $0x8] ss:$16 sps:$4 sm:$0xff]  }
  0x18   : > { %v4461_v34 = vld [vmem:[%s6414_s1 + $0x304] ss:$16 sps:$4 sm:$0xff]   ;;  %v4464_v36 = vld [vmem:[%s6414_s1 + $0x300] ss:$16 sps:$4 sm:$0xff]   ;;  %v303_v15 = vld [vmem:[%s5065_s30 + $0x78] sm:$0xff] }
  0x19   : > { %1688 = vmatpush1.bf16.msra.mxu1 %v4439_v19  ;;  %v4465_v37 = vld [vmem:[%s6414_s1 + $0x124] ss:$16 sps:$4 sm:$0xff]   ;;  %v4469_v39 = vld [vmem:[%s6414_s1 + $0x120] ss:$16 sps:$4 sm:$0xff]   ;;  %v305_v19 = vld [vmem:[%s5065_s30 + $0x88] sm:$0xff] }
  0x1a   : > { %1801 = vmatpush1.bf16.msra.mxu0 %v4440_v20  ;;  %1689 = vmatprep.subr.bf16.mxu1 %v4441_v21  ;;  %v4467_v38 = vld [vmem:[%s6414_s1 + $0x324] ss:$16 sps:$4 sm:$0xff]   ;;  %v4470_v40 = vld [vmem:[%s6414_s1 + $0x320] ss:$16 sps:$4 sm:$0xff]  }
  0x1b   : > { %1802 = vmatprep.subr.bf16.mxu0 %v4443_v22  ;;  %v4471_v41 = vld [vmem:[%s6414_s1 + $0x144] ss:$16 sps:$4 sm:$0xff]   ;;  %v4475_v43 = vld [vmem:[%s6414_s1 + $0x140] ss:$16 sps:$4 sm:$0xff]   ;;  %v4518_v22 = vld [vmem:[%s6414_s1 + $0x2c] ss:$16 sps:$4 sm:$0xff]  }
  0x1c   : > { %v4473_v42 = vld [vmem:[%s6414_s1 + $0x344] ss:$16 sps:$4 sm:$0xff]   ;;  %v4476_v44 = vld [vmem:[%s6414_s1 + $0x340] ss:$16 sps:$4 sm:$0xff]  }
  0x1d   : > { %1690 = vmatpush1.bf16.msra.mxu1 %v4445_v23  ;;  %v4477_v45 = vld [vmem:[%s6414_s1 + $0x164] ss:$16 sps:$4 sm:$0xff]   ;;  %v4481_v51 = vld [vmem:[%s6414_s1 + $0x160] ss:$16 sps:$4 sm:$0xff]  }
  0x1e   : > { %1803 = vmatpush1.bf16.msra.mxu0 %v4446_v24  ;;  %1691 = vmatprep.subr.bf16.mxu1 %v4447_v25  ;;  %v4479_v46 = vld [vmem:[%s6414_s1 + $0x364] ss:$16 sps:$4 sm:$0xff]   ;;  %v4482_v52 = vld [vmem:[%s6414_s1 + $0x360] ss:$16 sps:$4 sm:$0xff]  }
  0x1f   : > { %1804 = vmatprep.subr.bf16.mxu0 %v4449_v26  ;;  %v296_v48 = vld [vmem:[%s5065_s30 + $0x40] sm:$0xff]  ;;  %v298_v50 = vld [vmem:[%s5065_s30 + $0x50] sm:$0xff]  ;;  %v4516_v26 = vld [vmem:[%s6414_s1 + $0x28] ss:$16 sps:$4 sm:$0xff]  }
  0x20   : > { %v4483_v53 = vld [vmem:[%s6414_s1 + $0x184] ss:$16 sps:$4 sm:$0xff]   ;;  %v5086_v54 = vpack.c.bf16 %v296_v48, %v289_v47  ;;  %v5088_v55 = vpack.c.bf16 %v298_v50, %v291_v49  ;;  %v4487_v57 = vld [vmem:[%s6414_s1 + $0x180] ss:$16 sps:$4 sm:$0xff]   ;;  %v323_v48 = vld [vmem:[%s5065_s30 + $0x118] sm:$0xff] }
  0x21   : > { %1692 = vmatpush1.bf16.msra.mxu1 %v4451_v27  ;;  %v4485_v56 = vld [vmem:[%s6414_s1 + $0x384] ss:$16 sps:$4 sm:$0xff]   ;;  %v4488_v58 = vld [vmem:[%s6414_s1 + $0x380] ss:$16 sps:$4 sm:$0xff]   ;;  %v325_v50 = vld [vmem:[%s5065_s30 + $0x128] sm:$0xff] }
  0x22   : > { %1805 = vmatpush1.bf16.msra.mxu0 %v4452_v28  ;;  %1693 = vmatprep.subr.bf16.mxu1 %v4453_v29  ;;  %v4489_v59 = vld [vmem:[%s6414_s1 + $0x1a4] ss:$16 sps:$4 sm:$0xff]   ;;  %v4493_v61 = vld [vmem:[%s6414_s1 + $0x1a0] ss:$16 sps:$4 sm:$0xff]   ;;  %v309_v28 = vld [vmem:[%s5065_s30 + $0xa8] sm:$0xff] }
  0x23   : > { %1806 = vmatprep.subr.bf16.mxu0 %v4455_v30  ;;  %1711 = vmatprep.mubr.bf16.mxu1 %v5086_v54  ;;  %v4491_v60 = vld [vmem:[%s6414_s1 + $0x3a4] ss:$16 sps:$4 sm:$0xff]   ;;  %v4494_v62 = vld [vmem:[%s6414_s1 + $0x3a0] ss:$16 sps:$4 sm:$0xff]   ;;  %v311_v30 = vld [vmem:[%s5065_s30 + $0xb8] sm:$0xff] }
  0x24   : > { %1824 = vmatprep.mubr.bf16.mxu0 %v5088_v55  ;;  %v4495_v63 = vld [vmem:[%s6414_s1 + $0x1c4] ss:$16 sps:$4 sm:$0xff]   ;;  %v4499_v1 = vld [vmem:[%s6414_s1 + $0x1c0] ss:$16 sps:$4 sm:$0xff]  }
  0x25   : > { %1694 = vmatpush1.bf16.msra.mxu1 %v4457_v31  ;;  %v4497_v0 = vld [vmem:[%s6414_s1 + $0x3c4] ss:$16 sps:$4 sm:$0xff]   ;;  %v4500_v2 = vld [vmem:[%s6414_s1 + $0x3c0] ss:$16 sps:$4 sm:$0xff]  }
  0x26   : > { %1807 = vmatpush1.bf16.msra.mxu0 %v4458_v32  ;;  %1695 = vmatprep.subr.bf16.mxu1 %v4459_v33  ;;  %v4501_v3 = vld [vmem:[%s6414_s1 + $0x1e4] ss:$16 sps:$4 sm:$0xff]   ;;  %v4505_v5 = vld [vmem:[%s6414_s1 + $0x1e0] ss:$16 sps:$4 sm:$0xff]   ;;  %v4524_v32 = vld [vmem:[%s6414_s1 + $0x4c] ss:$16 sps:$4 sm:$0xff]  }
  0x27   : > { %1808 = vmatprep.subr.bf16.mxu0 %v4461_v34  ;;  %v4503_v4 = vld [vmem:[%s6414_s1 + $0x3e4] ss:$16 sps:$4 sm:$0xff]   ;;  %v4506_v6 = vld [vmem:[%s6414_s1 + $0x3e0] ss:$16 sps:$4 sm:$0xff]   ;;  %v4522_v34 = vld [vmem:[%s6414_s1 + $0x48] ss:$16 sps:$4 sm:$0xff]  }
  0x28   : > { %v288_v7 = vld [vmem:[%s5065_s30] sm:$0xff]  ;;  %v290_v9 = vld [vmem:[%s5065_s30 + $0x10] sm:$0xff] }
  0x29   : > { %1696 = vmatpush1.bf16.msra.mxu1 %v4463_v35  ;;  %v4509_v11 = vld [vmem:[%s6414_s1 + $0x404] ss:$16 sps:$4 sm:$0xff]   ;;  %v4507_v13 = vld [vmem:[%s6414_s1 + $0x400] ss:$16 sps:$4 sm:$0xff]   ;;  %v5155_v17 = vpack.c.bf16 %v295_v8, %v288_v7  ;;  %v5157_v18 = vpack.c.bf16 %v297_v10, %v290_v9  ;;  %v317_v35 = vld [vmem:[%s5065_s30 + $0xe8] sm:$0xff] }
  0x2a   : > { %1809 = vmatpush1.bf16.msra.mxu0 %v4464_v36  ;;  %1697 = vmatprep.subr.bf16.mxu1 %v4465_v37  ;;  %v310_v16 = vld [vmem:[%s5065_s30 + $0xb0] sm:$0xff]  ;;  %v312_v20 = vld [vmem:[%s5065_s30 + $0xc0] sm:$0xff]  ;;  %v339_v8 = vld [vmem:[%s5065_s30 + $0x198] sm:$0xff] }
  0x2b   : > { %1810 = vmatprep.subr.bf16.mxu0 %v4467_v38  ;;  %v4515_v21 = vld [vmem:[%s6414_s1 + $0x424] ss:$16 sps:$4 sm:$0xff]   ;;  %v4513_v23 = vld [vmem:[%s6414_s1 + $0x420] ss:$16 sps:$4 sm:$0xff]   ;;  %v5170_v24 = vpack.c.bf16 %v310_v16, %v303_v15  ;;  %v5172_v25 = vpack.c.bf16 %v312_v20, %v305_v19  ;;  %v4548_v10 = vld [vmem:[%s6414_s1 + $0xcc] ss:$16 sps:$4 sm:$0xff]  }
  0x2c   : > { %v302_v27 = vld [vmem:[%s5065_s30 + $0x70] sm:$0xff]  ;;  %v304_v29 = vld [vmem:[%s5065_s30 + $0x80] sm:$0xff]  ;;  %v347_v19 = vld [vmem:[%s5065_s30 + $0x1d8] sm:$0xff] }
  0x2d   : > { %1698 = vmatpush1.bf16.msra.mxu1 %v4469_v39  ;;  %v4521_v31 = vld [vmem:[%s6414_s1 + $0x444] ss:$16 sps:$4 sm:$0xff]   ;;  %v4519_v33 = vld [vmem:[%s6414_s1 + $0x440] ss:$16 sps:$4 sm:$0xff]   ;;  %v5199_v37 = vpack.c.bf16 %v309_v28, %v302_v27  ;;  %v5201_v38 = vpack.c.bf16 %v311_v30, %v304_v29  ;;  %v319_v39 = vld [vmem:[%s5065_s30 + $0xf8] sm:$0xff] }
  0x2e   : > { %1811 = vmatpush1.bf16.msra.mxu0 %v4470_v40  ;;  %1699 = vmatprep.subr.bf16.mxu1 %v4471_v41  ;;  %v324_v36 = vld [vmem:[%s5065_s30 + $0x120] sm:$0xff]  ;;  %v326_v40 = vld [vmem:[%s5065_s30 + $0x130] sm:$0xff]  ;;  %v4552_v28 = vld [vmem:[%s6414_s1 + $0xe8] ss:$16 sps:$4 sm:$0xff]  }
  0x2f   : > { %1812 = vmatprep.subr.bf16.mxu0 %v4473_v42  ;;  %v4527_v41 = vld [vmem:[%s6414_s1 + $0x464] ss:$16 sps:$4 sm:$0xff]   ;;  %v4530_v42 = vld [vmem:[%s6414_s1 + $0x6c] ss:$16 sps:$4 sm:$0xff]  }
  0x30   : > { %v316_v47 = vld [vmem:[%s5065_s30 + $0xe0] sm:$0xff]  ;;  %v318_v49 = vld [vmem:[%s5065_s30 + $0xf0] sm:$0xff]  ;;  %v351_v30 = vld [vmem:[%s5065_s30 + $0x1f8] sm:$0xff] }
  0x31   : > { %1700 = vmatpush1.bf16.msra.mxu1 %v4475_v43  ;;  %v4525_v43 = vld [vmem:[%s6414_s1 + $0x460] ss:$16 sps:$4 sm:$0xff]   ;;  %v4545_v9 = vld [vmem:[%s6414_s1 + $0x4c4] ss:$16 sps:$4 sm:$0xff]  }
  0x32   : > { %1813 = vmatpush1.bf16.msra.mxu0 %v4476_v44  ;;  %1701 = vmatprep.subr.bf16.mxu1 %v4477_v45  ;;  %v5214_v44 = vpack.c.bf16 %v324_v36, %v317_v35  ;;  %v5216_v45 = vpack.c.bf16 %v326_v40, %v319_v39  ;;  %v332_v7 = vld [vmem:[%s5065_s30 + $0x160] sm:$0xff]  ;;  %v354_v20 = vld [vmem:[%s5065_s30 + $0x210] sm:$0xff]  ;;  %v4558_v36 = vld [vmem:[%s6414_s1 + $0x108] ss:$16 sps:$4 sm:$0xff]  }
  0x33   : > { %1814 = vmatprep.subr.bf16.mxu0 %v4479_v46  ;;  %v4528_v46 = vld [vmem:[%s6414_s1 + $0x68] ss:$16 sps:$4 sm:$0xff]   ;;  %v5289_v16 = vpack.c.bf16 %v339_v8, %v332_v7  ;;  %v5304_v27 = vpack.c.bf16 %v354_v20, %v347_v19  ;;  %v344_v29 = vld [vmem:[%s5065_s30 + $0x1c0] sm:$0xff]  ;;  %v366_v40 = vld [vmem:[%s5065_s30 + $0x270] sm:$0xff] }
  0x34   : > { %v4555_v35 = vld [vmem:[%s6414_s1 + $0x500] ss:$16 sps:$4 sm:$0xff]   ;;  %v359_v39 = vld [vmem:[%s5065_s30 + $0x238] sm:$0xff] }
  0x35   : > { %1702 = vmatpush1.bf16.msra.mxu1 %v4481_v51  ;;  %v4533_v51 = vld [vmem:[%s6414_s1 + $0x484] ss:$16 sps:$4 sm:$0xff]   ;;  %v375_v7 = vld [vmem:[%s5065_s30 + $0x2b8] sm:$0xff] }
  0x36   : > { %1815 = vmatpush1.bf16.msra.mxu0 %v4482_v52  ;;  %1703 = vmatprep.subr.bf16.mxu1 %v4483_v53  ;;  %v4536_v52 = vld [vmem:[%s6414_s1 + $0x8c] ss:$16 sps:$4 sm:$0xff]   ;;  %v4531_v53 = vld [vmem:[%s6414_s1 + $0x480] ss:$16 sps:$4 sm:$0xff]  }
  0x37   : > { %1816 = vmatprep.subr.bf16.mxu0 %v4485_v56  ;;  %v4534_v56 = vld [vmem:[%s6414_s1 + $0x88] ss:$16 sps:$4 sm:$0xff]   ;;  %v382_v8 = vld [vmem:[%s5065_s30 + $0x2f0] sm:$0xff]  ;;  %v372_v19 = vld [vmem:[%s5065_s30 + $0x2a0] sm:$0xff] }
  0x38   : > { %v379_v20 = vld [vmem:[%s5065_s30 + $0x2d8] sm:$0xff] }
  0x39   : > { %1704 = vmatpush1.bf16.msra.mxu1 %v4487_v57  ;;  %v331_v57 = vld [vmem:[%s5065_s30 + $0x158] sm:$0xff] }
  0x3a   : > { %1817 = vmatpush1.bf16.msra.mxu0 %v4488_v58  ;;  %1705 = vmatprep.subr.bf16.mxu1 %v4489_v59  ;;  %v338_v58 = vld [vmem:[%s5065_s30 + $0x190] sm:$0xff]  ;;  %v5243_v59 = vpack.c.bf16 %v323_v48, %v316_v47  ;;  %v4566_v48 = vld [vmem:[%s6414_s1 + $0x12c] ss:$16 sps:$4 sm:$0xff]  }
  0x3b   : > { %1818 = vmatprep.subr.bf16.mxu0 %v4491_v60  ;;  %v5245_v60 = vpack.c.bf16 %v325_v50, %v318_v49  ;;  %v4563_v47 = vld [vmem:[%s6414_s1 + $0x524] ss:$16 sps:$4 sm:$0xff]   ;;  %v4561_v49 = vld [vmem:[%s6414_s1 + $0x520] ss:$16 sps:$4 sm:$0xff]   ;;  %v5346_v50 = vpack.c.bf16 %v366_v40, %v359_v39  ;;  %v4590_v40 = vld [vmem:[%s6414_s1 + $0x1ac] ss:$16 sps:$4 sm:$0xff]  }
  0x3c   : > { %v4587_v39 = vld [vmem:[%s6414_s1 + $0x5a4] ss:$16 sps:$4 sm:$0xff]  }
  0x3d   : > { %1706 = vmatpush1.bf16.msra.mxu1 %v4493_v61  ;;  %v333_v61 = vld [vmem:[%s5065_s30 + $0x168] sm:$0xff] }
  0x3e   : > { %1819 = vmatpush1.bf16.msra.mxu0 %v4494_v62  ;;  %1707 = vmatprep.subr.bf16.mxu1 %v4495_v63  ;;  %v340_v62 = vld [vmem:[%s5065_s30 + $0x1a0] sm:$0xff] }
  0x3f   : > { %1820 = vmatprep.subr.bf16.mxu0 %v4497_v0  ;;  %v4539_v63 = vld [vmem:[%s6414_s1 + $0x4a4] ss:$16 sps:$4 sm:$0xff]   ;;  %v4542_v0 = vld [vmem:[%s6414_s1 + $0xac] ss:$16 sps:$4 sm:$0xff]  }
  0x41   : > { %1708 = vmatpush1.bf16.msra.mxu1 %v4499_v1  ;;  %v4537_v1 = vld [vmem:[%s6414_s1 + $0x4a0] ss:$16 sps:$4 sm:$0xff]  }
  0x42   : > { %1821 = vmatpush1.bf16.msra.mxu0 %v4500_v2  ;;  %1709 = vmatprep.subr.bf16.mxu1 %v4501_v3  ;;  %v5258_v2 = vpack.c.bf16 %v338_v58, %v331_v57  ;;  %v5260_v3 = vpack.c.bf16 %v340_v62, %v333_v61  ;;  %v360_v57 = vld [vmem:[%s5065_s30 + $0x240] sm:$0xff]  ;;  %v367_v58 = vld [vmem:[%s5065_s30 + $0x278] sm:$0xff] }
  0x43   : > { %1822 = vmatprep.subr.bf16.mxu0 %v4503_v4  ;;  %v4540_v4 = vld [vmem:[%s6414_s1 + $0xa8] ss:$16 sps:$4 sm:$0xff]   ;;  %v4569_v61 = vld [vmem:[%s6414_s1 + $0x544] ss:$16 sps:$4 sm:$0xff]   ;;  %v4572_v62 = vld [vmem:[%s6414_s1 + $0x14c] ss:$16 sps:$4 sm:$0xff]  }
  0x45   : > { %1710 = vmatpush1.bf16.msra.mxu1 %v4505_v5  ;;  %v330_v5 = vld [vmem:[%s5065_s30 + $0x150] sm:$0xff] }
  0x46   : > { %1823 = vmatpush1.bf16.msra.mxu0 %v4506_v6  ;;  %2131 = vmatprep.subr.bf16.mxu1 %v4512_v12  ;;  %v337_v6 = vld [vmem:[%s5065_s30 + $0x188] sm:$0xff] }
  0x47   : > { %1905 = vmatprep.subr.bf16.mxu0 %v4509_v11  ;;  %v4543_v11 = vld [vmem:[%s6414_s1 + $0x4c0] ss:$16 sps:$4 sm:$0xff]   ;;  %v4546_v12 = vld [vmem:[%s6414_s1 + $0xc8] ss:$16 sps:$4 sm:$0xff]   ;;  %v5287_v15 = vpack.c.bf16 %v337_v6, %v330_v5  ;;  %v5377_v6 = vpack.c.bf16 %v367_v58, %v360_v57  ;;  %v4593_v57 = vld [vmem:[%s6414_s1 + $0x5c4] ss:$16 sps:$4 sm:$0xff]  }
  0x48   : > { %1712 = vmatmul.mubr.bf16.vlgmr.msra.gmra.mrb[0].mxu1 %v5155_v17  ;;  %v4596_v58 = vld [vmem:[%s6414_s1 + $0x1cc] ss:$16 sps:$4 sm:$0xff]  }
  0x49   : > { %1825 = vmatmul.mubr.bf16.vlgmr.msra.gmra.mrb[0].mxu0 %v5157_v18  ;;  %2132 = vmatpush1.bf16.msra.mxu1 %v4510_v14  ;;  %v352_v14 = vld [vmem:[%s5065_s30 + $0x200] sm:$0xff] }
  0x4a   : > { %1906 = vmatpush1.bf16.msra.mxu0 %v4507_v13  ;;  %2133 = vmatprep.subr.bf16.mxu1 %v4518_v22  ;;  %v345_v13 = vld [vmem:[%s5065_s30 + $0x1c8] sm:$0xff] }
  0x4b   : > { %1907 = vmatprep.subr.bf16.mxu0 %v4515_v21  ;;  %1721 = vmatprep.mubr.bf16.mxu1 %v5170_v24  ;;  %v4551_v21 = vld [vmem:[%s6414_s1 + $0x4e4] ss:$16 sps:$4 sm:$0xff]   ;;  %v4554_v22 = vld [vmem:[%s6414_s1 + $0xec] ss:$16 sps:$4 sm:$0xff]  }
  0x4c   : > { %1834 = vmatprep.mubr.bf16.mxu0 %v5172_v25 }
  0x4d   : > { %2134 = vmatpush1.bf16.msra.mxu1 %v4516_v26  ;;  %v5302_v26 = vpack.c.bf16 %v352_v14, %v345_v13  ;;  %v5395_v14 = vpack.c.bf16 %v382_v8, %v375_v7  ;;  %v4599_v7 = vld [vmem:[%s6414_s1 + $0x5e4] ss:$16 sps:$4 sm:$0xff]   ;;  %v4602_v8 = vld [vmem:[%s6414_s1 + $0x1ec] ss:$16 sps:$4 sm:$0xff]  }
  0x4e   : > { %1908 = vmatpush1.bf16.msra.mxu0 %v4513_v23  ;;  %2135 = vmatprep.subr.bf16.mxu1 %v4524_v32  ;;  %v4549_v23 = vld [vmem:[%s6414_s1 + $0x4e0] ss:$16 sps:$4 sm:$0xff]   ;;  %v353_v32 = vld [vmem:[%s5065_s30 + $0x208] sm:$0xff] }
  0x4f   : > { %1909 = vmatprep.subr.bf16.mxu0 %v4521_v31  ;;  %v346_v31 = vld [vmem:[%s5065_s30 + $0x1d0] sm:$0xff] }
  0x50   : > { %1722 = vmatmul.mubr.bf16.gmra.mrb[4].mxu1 %v5199_v37 }
  0x51   : > { %1835 = vmatmul.mubr.bf16.gmra.mrb[4].mxu0 %v5201_v38  ;;  %2136 = vmatpush1.bf16.msra.mxu1 %v4522_v34  ;;  %v4560_v34 = vld [vmem:[%s6414_s1 + $0x10c] ss:$16 sps:$4 sm:$0xff]  }
  0x52   : > { %1910 = vmatpush1.bf16.msra.mxu0 %v4519_v33  ;;  %2137 = vmatprep.subr.bf16.mxu1 %v4530_v42  ;;  %v4557_v33 = vld [vmem:[%s6414_s1 + $0x504] ss:$16 sps:$4 sm:$0xff]   ;;  %v5333_v42 = vpack.c.bf16 %v353_v32, %v346_v31  ;;  %v387_v31 = vld [vmem:[%s5065_s30 + $0x318] sm:$0xff]  ;;  %v5418_v32 = vpack.c.bf16 %v379_v20, %v372_v19 }
  0x53   : > { %1911 = vmatprep.subr.bf16.mxu0 %v4527_v41  ;;  %1731 = vmatprep.mubr.bf16.mxu1 %v5214_v44  ;;  %v5331_v41 = vpack.c.bf16 %v351_v30, %v344_v29  ;;  %v4579_v29 = vld [vmem:[%s6414_s1 + $0x580] ss:$16 sps:$4 sm:$0xff]   ;;  %v4582_v30 = vld [vmem:[%s6414_s1 + $0x188] ss:$16 sps:$4 sm:$0xff]   ;;  %v4605_v20 = vld [vmem:[%s6414_s1 + $0x20c] ss:$16 sps:$4 sm:$0xff]  }
  0x54   : > { %1844 = vmatprep.mubr.bf16.mxu0 %v5216_v45  ;;  %v299_v19 = vld [vmem:[%s5065_s30 + $0x58] sm:$0xff] }
  0x55   : > { %2138 = vmatpush1.bf16.msra.mxu1 %v4528_v46  ;;  %v368_v46 = vld [vmem:[%s5065_s30 + $0x280] sm:$0xff] }
  0x56   : > { %1912 = vmatpush1.bf16.msra.mxu0 %v4525_v43  ;;  %2139 = vmatprep.subr.bf16.mxu1 %v4536_v52  ;;  %v361_v43 = vld [vmem:[%s5065_s30 + $0x248] sm:$0xff] }
  0x57   : > { %1913 = vmatprep.subr.bf16.mxu0 %v4533_v51  ;;  %v5348_v51 = vpack.c.bf16 %v368_v46, %v361_v43  ;;  %v4564_v52 = vld [vmem:[%s6414_s1 + $0x128] ss:$16 sps:$4 sm:$0xff]   ;;  %v4585_v43 = vld [vmem:[%s6414_s1 + $0x5a0] ss:$16 sps:$4 sm:$0xff]  }
  0x58   : > { %1732 = vmatmul.mubr.bf16.gmra.mrb[8].mxu1 %v5243_v59  ;;  %v4588_v46 = vld [vmem:[%s6414_s1 + $0x1a8] ss:$16 sps:$4 sm:$0xff]  }
  0x59   : > { %1845 = vmatmul.mubr.bf16.gmra.mrb[8].mxu0 %v5245_v60  ;;  %2140 = vmatpush1.bf16.msra.mxu1 %v4534_v56  ;;  %v365_v56 = vld [vmem:[%s5065_s30 + $0x268] sm:$0xff] }
  0x5a   : > { %1914 = vmatpush1.bf16.msra.mxu0 %v4531_v53  ;;  %2141 = vmatprep.subr.bf16.mxu1 %v4542_v0  ;;  %v358_v53 = vld [vmem:[%s5065_s30 + $0x230] sm:$0xff]  ;;  %v4570_v0 = vld [vmem:[%s6414_s1 + $0x148] ss:$16 sps:$4 sm:$0xff]  }
  0x5b   : > { %1915 = vmatprep.subr.bf16.mxu0 %v4539_v63  ;;  %1741 = vmatprep.mubr.bf16.mxu1 %v5258_v2  ;;  %v4567_v63 = vld [vmem:[%s6414_s1 + $0x540] ss:$16 sps:$4 sm:$0xff]   ;;  %v5375_v5 = vpack.c.bf16 %v365_v56, %v358_v53  ;;  %v395_v56 = vld [vmem:[%s5065_s30 + $0x358] sm:$0xff] }
  0x5c   : > { %1854 = vmatprep.mubr.bf16.mxu0 %v5260_v3  ;;  %v388_v53 = vld [vmem:[%s5065_s30 + $0x320] sm:$0xff] }
  0x5d   : > { %2142 = vmatpush1.bf16.msra.mxu1 %v4540_v4  ;;  %v380_v4 = vld [vmem:[%s5065_s30 + $0x2e0] sm:$0xff] }
  0x5e   : > { %1916 = vmatpush1.bf16.msra.mxu0 %v4537_v1  ;;  %2143 = vmatprep.subr.bf16.mxu1 %v4548_v10  ;;  %v373_v1 = vld [vmem:[%s5065_s30 + $0x2a8] sm:$0xff] }
  0x5f   : > { %1917 = vmatprep.subr.bf16.mxu0 %v4545_v9  ;;  %v4575_v9 = vld [vmem:[%s6414_s1 + $0x564] ss:$16 sps:$4 sm:$0xff]   ;;  %v4578_v10 = vld [vmem:[%s6414_s1 + $0x16c] ss:$16 sps:$4 sm:$0xff]   ;;  %v5393_v13 = vpack.c.bf16 %v380_v4, %v373_v1 }
  0x60   : > { %1742 = vmatmul.mubr.bf16.gmra.mrb[12].mxu1 %v5287_v15  ;;  %v293_v1 = vld [vmem:[%s5065_s30 + $0x28] sm:$0xff]  ;;  %v300_v4 = vld [vmem:[%s5065_s30 + $0x60] sm:$0xff] }
  0x61   : > { %1855 = vmatmul.mubr.bf16.gmra.mrb[12].mxu0 %v5289_v16  ;;  %2144 = vmatpush1.bf16.msra.mxu1 %v4546_v12  ;;  %v4576_v12 = vld [vmem:[%s6414_s1 + $0x168] ss:$16 sps:$4 sm:$0xff]  }
  0x62   : > { %1918 = vmatpush1.bf16.msra.mxu0 %v4543_v11  ;;  %2145 = vmatprep.subr.bf16.mxu1 %v4554_v22  ;;  %v4573_v11 = vld [vmem:[%s6414_s1 + $0x560] ss:$16 sps:$4 sm:$0xff]   ;;  %v381_v22 = vld [vmem:[%s5065_s30 + $0x2e8] sm:$0xff] }
  0x63   : > { %1919 = vmatprep.subr.bf16.mxu0 %v4551_v21  ;;  %1751 = vmatprep.mubr.bf16.mxu1 %v5302_v26  ;;  %v374_v21 = vld [vmem:[%s5065_s30 + $0x2b0] sm:$0xff] }
  0x64   : > { %1864 = vmatprep.mubr.bf16.mxu0 %v5304_v27 }
  0x65   : > { %2146 = vmatpush1.bf16.msra.mxu1 %v4552_v28  ;;  %v4584_v28 = vld [vmem:[%s6414_s1 + $0x18c] ss:$16 sps:$4 sm:$0xff]  }
  0x66   : > { %1920 = vmatpush1.bf16.msra.mxu0 %v4549_v23  ;;  %2147 = vmatprep.subr.bf16.mxu1 %v4560_v34  ;;  %v4581_v23 = vld [vmem:[%s6414_s1 + $0x584] ss:$16 sps:$4 sm:$0xff]  }
  0x67   : > { %1921 = vmatprep.subr.bf16.mxu0 %v4557_v33  ;;  %v5420_v33 = vpack.c.bf16 %v381_v22, %v374_v21  ;;  %v394_v34 = vld [vmem:[%s5065_s30 + $0x350] sm:$0xff]  ;;  %v307_v21 = vld [vmem:[%s5065_s30 + $0x98] sm:$0xff] }
  0x68   : > { %1752 = vmatmul.mubr.bf16.gmra.mrb[16].mxu1 %v5331_v41  ;;  %v314_v22 = vld [vmem:[%s5065_s30 + $0xd0] sm:$0xff] }
  0x69   : > { %1865 = vmatmul.mubr.bf16.gmra.mrb[16].mxu0 %v5333_v42  ;;  %2148 = vmatpush1.bf16.msra.mxu1 %v4558_v36  ;;  %v396_v36 = vld [vmem:[%s5065_s30 + $0x360] sm:$0xff] }
  0x6a   : > { %1922 = vmatpush1.bf16.msra.mxu0 %v4555_v35  ;;  %2149 = vmatprep.subr.bf16.mxu1 %v4566_v48  ;;  %v389_v35 = vld [vmem:[%s5065_s30 + $0x328] sm:$0xff] }
  0x6b   : > { %1923 = vmatprep.subr.bf16.mxu0 %v4563_v47  ;;  %1761 = vmatprep.mubr.bf16.mxu1 %v5346_v50  ;;  %v5437_v47 = vpack.c.bf16 %v394_v34, %v387_v31  ;;  %v5439_v48 = vpack.c.bf16 %v396_v36, %v389_v35  ;;  %v306_v31 = vld [vmem:[%s5065_s30 + $0x90] sm:$0xff]  ;;  %v313_v34 = vld [vmem:[%s5065_s30 + $0xc8] sm:$0xff] }
  0x6c   : > { %1874 = vmatprep.mubr.bf16.mxu0 %v5348_v51  ;;  %v4611_v35 = vld [vmem:[%s6414_s1 + $0x24c] ss:$16 sps:$4 sm:$0xff]  }
  0x6d   : > { %2150 = vmatpush1.bf16.msra.mxu1 %v4564_v52  ;;  %v393_v52 = vld [vmem:[%s5065_s30 + $0x348] sm:$0xff] }
  0x6e   : > { %1924 = vmatpush1.bf16.msra.mxu0 %v4561_v49  ;;  %2151 = vmatprep.subr.bf16.mxu1 %v4572_v62  ;;  %v386_v49 = vld [vmem:[%s5065_s30 + $0x310] sm:$0xff]  ;;  %v321_v36 = vld [vmem:[%s5065_s30 + $0x108] sm:$0xff] }
  0x6f   : > { %1925 = vmatprep.subr.bf16.mxu0 %v4569_v61  ;;  %v4591_v61 = vld [vmem:[%s6414_s1 + $0x5c0] ss:$16 sps:$4 sm:$0xff]   ;;  %v5458_v62 = vpack.c.bf16 %v393_v52, %v386_v49  ;;  %v4650_v49 = vld [vmem:[%s6414_s1 + $0x604] ss:$16 sps:$4 sm:$0xff]  }
  0x70   : > { %1762 = vmatmul.mubr.bf16.gmra.mrb[20].mxu1 %v5375_v5  ;;  %v320_v52 = vld [vmem:[%s5065_s30 + $0x100] sm:$0xff] }
  0x71   : > { %1875 = vmatmul.mubr.bf16.gmra.mrb[20].mxu0 %v5377_v6  ;;  %2152 = vmatpush1.bf16.msra.mxu1 %v4570_v0  ;;  %v4594_v0 = vld [vmem:[%s6414_s1 + $0x1c8] ss:$16 sps:$4 sm:$0xff]  }
  0x72   : > { %1926 = vmatpush1.bf16.msra.mxu0 %v4567_v63  ;;  %2153 = vmatprep.subr.bf16.mxu1 %v4578_v10  ;;  %v5460_v63 = vpack.c.bf16 %v395_v56, %v388_v53  ;;  %v4600_v10 = vld [vmem:[%s6414_s1 + $0x1e8] ss:$16 sps:$4 sm:$0xff]   ;;  %v4648_v53 = vld [vmem:[%s6414_s1 + $0x600] ss:$16 sps:$4 sm:$0xff]  }
  0x73   : > { %1927 = vmatprep.subr.bf16.mxu0 %v4575_v9  ;;  %1771 = vmatprep.mubr.bf16.mxu1 %v5393_v13  ;;  %v4597_v9 = vld [vmem:[%s6414_s1 + $0x5e0] ss:$16 sps:$4 sm:$0xff]   ;;  %v327_v56 = vld [vmem:[%s5065_s30 + $0x138] sm:$0xff] }
  0x74   : > { %1884 = vmatprep.mubr.bf16.mxu0 %v5395_v14 }
  0x75   : > { %2154 = vmatpush1.bf16.msra.mxu1 %v4576_v12  ;;  %v292_v12 = vld [vmem:[%s5065_s30 + $0x20] sm:$0xff] }
  0x76   : > { %1928 = vmatpush1.bf16.msra.mxu0 %v4573_v11  ;;  %2155 = vmatprep.subr.bf16.mxu1 %v4584_v28  ;;  %v5479_v11 = vpack.c.bf16 %v300_v4, %v293_v1  ;;  %v4603_v28 = vld [vmem:[%s6414_s1 + $0x208] ss:$16 sps:$4 sm:$0xff]  }
  0x77   : > { %1929 = vmatprep.subr.bf16.mxu0 %v4581_v23  ;;  %v5492_v23 = vpack.c.bf16 %v299_v19, %v292_v12  ;;  %v4618_v4 = vld [vmem:[%s6414_s1 + $0x2a8] ss:$16 sps:$4 sm:$0xff]   ;;  %v356_v12 = vld [vmem:[%s5065_s30 + $0x220] sm:$0xff] }
  0x78   : > { %1772 = vmatmul.mubr.bf16.gmra.mrb[24].mxu1 %v5418_v32 }
  0x79   : > { %1885 = vmatmul.mubr.bf16.gmra.mrb[24].mxu0 %v5420_v33  ;;  %2156 = vmatpush1.bf16.msra.mxu1 %v4582_v30  ;;  %v4608_v30 = vld [vmem:[%s6414_s1 + $0x22c] ss:$16 sps:$4 sm:$0xff]  }
  0x7a   : > { %1930 = vmatpush1.bf16.msra.mxu0 %v4579_v29  ;;  %2157 = vmatprep.subr.bf16.mxu1 %v4590_v40  ;;  %v5497_v29 = vpack.c.bf16 %v314_v22, %v307_v21  ;;  %v5516_v40 = vpack.c.bf16 %v313_v34, %v306_v31  ;;  %v4626_v21 = vld [vmem:[%s6414_s1 + $0x2ec] ss:$16 sps:$4 sm:$0xff]   ;;  %v348_v22 = vld [vmem:[%s5065_s30 + $0x1e0] sm:$0xff]  ;;  %v370_v31 = vld [vmem:[%s5065_s30 + $0x290] sm:$0xff] }
  0x7b   : > { %1931 = vmatprep.subr.bf16.mxu0 %v4587_v39  ;;  %1781 = vmatprep.mubr.bf16.mxu1 %v5437_v47  ;;  %v328_v39 = vld [vmem:[%s5065_s30 + $0x140] sm:$0xff] }
  0x7c   : > { %1894 = vmatprep.mubr.bf16.mxu0 %v5439_v48 }
  0x7d   : > { %2158 = vmatpush1.bf16.msra.mxu1 %v4588_v46  ;;  %v4614_v46 = vld [vmem:[%s6414_s1 + $0x26c] ss:$16 sps:$4 sm:$0xff]  }
  0x7e   : > { %1932 = vmatpush1.bf16.msra.mxu0 %v4585_v43  ;;  %2159 = vmatprep.subr.bf16.mxu1 %v4596_v58  ;;  %v5521_v43 = vpack.c.bf16 %v328_v39, %v321_v36  ;;  %v335_v58 = vld [vmem:[%s5065_s30 + $0x178] sm:$0xff]  ;;  %v362_v39 = vld [vmem:[%s5065_s30 + $0x250] sm:$0xff] }
  0x7f   : > { %1933 = vmatprep.subr.bf16.mxu0 %v4593_v57  ;;  %v4617_v57 = vld [vmem:[%s6414_s1 + $0x28c] ss:$16 sps:$4 sm:$0xff]  }
  0x80   : > { %1782 = vmatmul.mubr.bf16.gmra.mrb[28].mxu1 %v5458_v62  ;;  %v4632_v36 = vld [vmem:[%s6414_s1 + $0x32c] ss:$16 sps:$4 sm:$0xff]  }
  0x81   : > { %1895 = vmatmul.mubr.bf16.gmra.mrb[28].mxu0 %v5460_v63  ;;  %2160 = vmatpush1.bf16.msra.mxu1 %v4594_v0  ;;  %v4615_v0 = vld [vmem:[%s6414_s1 + $0x288] ss:$16 sps:$4 sm:$0xff]  }
  0x82   : > { %1934 = vmatpush1.bf16.msra.mxu0 %v4591_v61  ;;  %2161 = vmatprep.subr.bf16.mxu1 %v4602_v8  ;;  %v5546_v61 = vpack.c.bf16 %v327_v56, %v320_v52  ;;  %v341_v8 = vld [vmem:[%s5065_s30 + $0x1a8] sm:$0xff] }
  0x83   : > { %1935 = vmatprep.subr.bf16.mxu0 %v4599_v7  ;;  %1937 = vmatprep.mubr.bf16.mxu0 %v5479_v11  ;;  %v334_v7 = vld [vmem:[%s5065_s30 + $0x170] sm:$0xff] }
  0x84   : > { %2163 = vmatprep.mubr.bf16.mxu1 %v5086_v54  ;;  %v4606_v54 = vld [vmem:[%s6414_s1 + $0x228] ss:$16 sps:$4 sm:$0xff]   ;;  %v5570_v19 = vpack.c.bf16 %v341_v8, %v334_v7 }
  0x85   : > { %2162 = vmatpush1.bf16.msra.mxu1 %v4600_v10  ;;  %v349_v10 = vld [vmem:[%s5065_s30 + $0x1e8] sm:$0xff] }
  0x86   : > { %1936 = vmatpush1.bf16.msra.mxu0 %v4597_v9  ;;  %2244 = vmatprep.subr.bf16.mxu1 %v4605_v20  ;;  %v4623_v9 = vld [vmem:[%s6414_s1 + $0x2cc] ss:$16 sps:$4 sm:$0xff]   ;;  %v5575_v20 = vpack.c.bf16 %v356_v12, %v349_v10 }
  0x87   : > { %2018 = vmatprep.subr.bf16.mxu0 %v4650_v49  ;;  %v384_v49 = vld [vmem:[%s5065_s30 + $0x300] sm:$0xff]  ;;  %v397_v10 = vld [vmem:[%s5065_s30 + $0x368] sm:$0xff] }
  0x88   : > { %2164 = vmatmul.mubr.bf16.vlgmr.msra.gmra.mrb[32].mxu1 %v5155_v17  ;;  %v4609_v17 = vld [vmem:[%s6414_s1 + $0x248] ss:$16 sps:$4 sm:$0xff]   ;;  %v4647_v12 = vld [vmem:[%s6414_s1 + $0x3cc] ss:$16 sps:$4 sm:$0xff]  }
  0x89   : > { %1938 = vmatmul.mubr.bf16.vlgmr.msra.gmra.mrb[0].mxu0 %v5492_v23  ;;  %2245 = vmatpush1.bf16.msra.mxu1 %v4603_v28  ;;  %v355_v28 = vld [vmem:[%s5065_s30 + $0x218] sm:$0xff] }
  0x8a   : > { %1947 = vmatprep.mubr.bf16.mxu0 %v5497_v29  ;;  %2246 = vmatprep.subr.bf16.mxu1 %v4608_v30  ;;  %v4629_v30 = vld [vmem:[%s6414_s1 + $0x30c] ss:$16 sps:$4 sm:$0xff]   ;;  %v5594_v34 = vpack.c.bf16 %v355_v28, %v348_v22  ;;  %v294_v22 = vld [vmem:[%s5065_s30 + $0x30] sm:$0xff] }
  0x8b   : > { %2173 = vmatprep.mubr.bf16.mxu1 %v5170_v24  ;;  %v4612_v24 = vld [vmem:[%s6414_s1 + $0x268] ss:$16 sps:$4 sm:$0xff]   ;;  %2019 = vmatpush1.bf16.msra.mxu0 %v4648_v53  ;;  %v4638_v53 = vld [vmem:[%s6414_s1 + $0x36c] ss:$16 sps:$4 sm:$0xff]  }
  0x8c   : > { %v301_v28 = vld [vmem:[%s5065_s30 + $0x68] sm:$0xff] }
  0x8d   : > { %2247 = vmatpush1.bf16.msra.mxu1 %v4606_v54  ;;  %v363_v54 = vld [vmem:[%s5065_s30 + $0x258] sm:$0xff] }
  0x8e   : > { %2248 = vmatprep.subr.bf16.mxu1 %v4611_v35  ;;  %v5599_v35 = vpack.c.bf16 %v370_v31, %v363_v54  ;;  %v5684_v54 = vpack.c.bf16 %v301_v28, %v294_v22  ;;  %v4659_v31 = vld [vmem:[%s6414_s1 + $0x42c] ss:$16 sps:$4 sm:$0xff]  }
  0x8f   : > { %v371_v22 = vld [vmem:[%s5065_s30 + $0x298] sm:$0xff] }
  0x90   : > { %2174 = vmatmul.mubr.bf16.gmra.mrb[36].mxu1 %v5199_v37  ;;  %v342_v37 = vld [vmem:[%s5065_s30 + $0x1b0] sm:$0xff]  ;;  %v4686_v28 = vld [vmem:[%s6414_s1 + $0x54c] ss:$16 sps:$4 sm:$0xff]  }
  0x91   : > { %1948 = vmatmul.mubr.bf16.gmra.mrb[4].mxu0 %v5516_v40  ;;  %2249 = vmatpush1.bf16.msra.mxu1 %v4609_v17  ;;  %v5551_v1 = vpack.c.bf16 %v342_v37, %v335_v58  ;;  %v369_v17 = vld [vmem:[%s5065_s30 + $0x288] sm:$0xff]  ;;  %v383_v58 = vld [vmem:[%s5065_s30 + $0x2f8] sm:$0xff] }
  0x92   : > { %1957 = vmatprep.mubr.bf16.mxu0 %v5521_v43  ;;  %2250 = vmatprep.subr.bf16.mxu1 %v4614_v46  ;;  %v4635_v46 = vld [vmem:[%s6414_s1 + $0x34c] ss:$16 sps:$4 sm:$0xff]   ;;  %v5618_v52 = vpack.c.bf16 %v369_v17, %v362_v39 }
  0x93   : > { %2183 = vmatprep.mubr.bf16.mxu1 %v5214_v44  ;;  %v4620_v44 = vld [vmem:[%s6414_s1 + $0x2ac] ss:$16 sps:$4 sm:$0xff]  }
  0x94   : > { %v4641_v37 = vld [vmem:[%s6414_s1 + $0x38c] ss:$16 sps:$4 sm:$0xff]  }
  0x95   : > { %2251 = vmatpush1.bf16.msra.mxu1 %v4612_v24  ;;  %v377_v24 = vld [vmem:[%s5065_s30 + $0x2c8] sm:$0xff] }
  0x96   : > { %2252 = vmatprep.subr.bf16.mxu1 %v4617_v57  ;;  %v5626_v56 = vpack.c.bf16 %v384_v49, %v377_v24  ;;  %v4636_v57 = vld [vmem:[%s6414_s1 + $0x368] ss:$16 sps:$4 sm:$0xff]   ;;  %v4665_v17 = vld [vmem:[%s6414_s1 + $0x46c] ss:$16 sps:$4 sm:$0xff]  }
  0x97   : > { %v329_v24 = vld [vmem:[%s5065_s30 + $0x148] sm:$0xff] }
  0x98   : > { %2184 = vmatmul.mubr.bf16.gmra.mrb[40].mxu1 %v5243_v59  ;;  %v4621_v59 = vld [vmem:[%s6414_s1 + $0x2c8] ss:$16 sps:$4 sm:$0xff]   ;;  %v4668_v49 = vld [vmem:[%s6414_s1 + $0x48c] ss:$16 sps:$4 sm:$0xff]  }
  0x99   : > { %1958 = vmatmul.mubr.bf16.gmra.mrb[8].mxu0 %v5546_v61  ;;  %2253 = vmatpush1.bf16.msra.mxu1 %v4615_v0  ;;  %v391_v0 = vld [vmem:[%s5065_s30 + $0x338] sm:$0xff] }
  0x9a   : > { %1967 = vmatprep.mubr.bf16.mxu0 %v5551_v1  ;;  %2254 = vmatprep.subr.bf16.mxu1 %v4620_v44  ;;  %v398_v44 = vld [vmem:[%s5065_s30 + $0x370] sm:$0xff] }
  0x9b   : > { %2193 = vmatprep.mubr.bf16.mxu1 %v5258_v2  ;;  %v4624_v2 = vld [vmem:[%s6414_s1 + $0x2e8] ss:$16 sps:$4 sm:$0xff]   ;;  %v5650_v8 = vpack.c.bf16 %v398_v44, %v391_v0  ;;  %v4677_v0 = vld [vmem:[%s6414_s1 + $0x4ec] ss:$16 sps:$4 sm:$0xff]   ;;  %v350_v44 = vld [vmem:[%s5065_s30 + $0x1f0] sm:$0xff] }
  0x9d   : > { %2255 = vmatpush1.bf16.msra.mxu1 %v4618_v4  ;;  %v4639_v4 = vld [vmem:[%s6414_s1 + $0x388] ss:$16 sps:$4 sm:$0xff]  }
  0x9e   : > { %2256 = vmatprep.subr.bf16.mxu1 %v4623_v9  ;;  %v4642_v9 = vld [vmem:[%s6414_s1 + $0x3a8] ss:$16 sps:$4 sm:$0xff]  }
  0xa0   : > { %2194 = vmatmul.mubr.bf16.gmra.mrb[44].mxu1 %v5287_v15  ;;  %v4627_v15 = vld [vmem:[%s6414_s1 + $0x308] ss:$16 sps:$4 sm:$0xff]  }
  0xa1   : > { %1968 = vmatmul.mubr.bf16.gmra.mrb[12].mxu0 %v5570_v19  ;;  %2257 = vmatpush1.bf16.msra.mxu1 %v4621_v59  ;;  %v4645_v59 = vld [vmem:[%s6414_s1 + $0x3c8] ss:$16 sps:$4 sm:$0xff]  }
  0xa2   : > { %1977 = vmatprep.mubr.bf16.mxu0 %v5575_v20  ;;  %2258 = vmatprep.subr.bf16.mxu1 %v4626_v21 }
  0xa3   : > { %2203 = vmatprep.mubr.bf16.mxu1 %v5302_v26  ;;  %v4630_v26 = vld [vmem:[%s6414_s1 + $0x328] ss:$16 sps:$4 sm:$0xff]  }
  0xa5   : > { %2259 = vmatpush1.bf16.msra.mxu1 %v4624_v2  ;;  %v4651_v2 = vld [vmem:[%s6414_s1 + $0x3e8] ss:$16 sps:$4 sm:$0xff]  }
  0xa6   : > { %2260 = vmatprep.subr.bf16.mxu1 %v4629_v30  ;;  %v4656_v30 = vld [vmem:[%s6414_s1 + $0x40c] ss:$16 sps:$4 sm:$0xff]  }
  0xa8   : > { %2204 = vmatmul.mubr.bf16.gmra.mrb[48].mxu1 %v5331_v41  ;;  %v4633_v41 = vld [vmem:[%s6414_s1 + $0x348] ss:$16 sps:$4 sm:$0xff]  }
  0xa9   : > { %1978 = vmatmul.mubr.bf16.gmra.mrb[16].mxu0 %v5594_v34  ;;  %2261 = vmatpush1.bf16.msra.mxu1 %v4627_v15  ;;  %v308_v15 = vld [vmem:[%s5065_s30 + $0xa0] sm:$0xff] }
  0xaa   : > { %1987 = vmatprep.mubr.bf16.mxu0 %v5599_v35  ;;  %2262 = vmatprep.subr.bf16.mxu1 %v4632_v36  ;;  %v315_v36 = vld [vmem:[%s5065_s30 + $0xd8] sm:$0xff] }
  0xab   : > { %2213 = vmatprep.mubr.bf16.mxu1 %v5346_v50  ;;  %v376_v50 = vld [vmem:[%s5065_s30 + $0x2c0] sm:$0xff]  ;;  %v5705_v39 = vpack.c.bf16 %v315_v36, %v308_v15  ;;  %v4687_v15 = vld [vmem:[%s6414_s1 + $0x568] ss:$16 sps:$4 sm:$0xff]   ;;  %v378_v36 = vld [vmem:[%s5065_s30 + $0x2d0] sm:$0xff] }
  0xac   : > { %v5645_v7 = vpack.c.bf16 %v383_v58, %v376_v50  ;;  %v343_v50 = vld [vmem:[%s5065_s30 + $0x1b8] sm:$0xff] }
  0xad   : > { %2263 = vmatpush1.bf16.msra.mxu1 %v4630_v26  ;;  %v4662_v26 = vld [vmem:[%s6414_s1 + $0x44c] ss:$16 sps:$4 sm:$0xff]  }
  0xae   : > { %2264 = vmatprep.subr.bf16.mxu1 %v4635_v46  ;;  %v322_v46 = vld [vmem:[%s5065_s30 + $0x110] sm:$0xff]  ;;  %v4674_v58 = vld [vmem:[%s6414_s1 + $0x4cc] ss:$16 sps:$4 sm:$0xff]  }
  0xb0   : > { %2214 = vmatmul.mubr.bf16.gmra.mrb[52].mxu1 %v5375_v5  ;;  %v4644_v5 = vld [vmem:[%s6414_s1 + $0x3ac] ss:$16 sps:$4 sm:$0xff]  }
  0xb1   : > { %1988 = vmatmul.mubr.bf16.gmra.mrb[20].mxu0 %v5618_v52  ;;  %2265 = vmatpush1.bf16.msra.mxu1 %v4633_v41  ;;  %v5726_v41 = vpack.c.bf16 %v329_v24, %v322_v46  ;;  %v4719_v46 = vld [vmem:[%s6416_s3 + $0x44] ss:$8 sps:$4 sm:$0xff]   ;;  %v4693_v24 = vld [vmem:[%s6414_s1 + $0x5a8] ss:$16 sps:$4 sm:$0xff]  }
  0xb2   : > { %1997 = vmatprep.mubr.bf16.mxu0 %v5626_v56  ;;  %2266 = vmatprep.subr.bf16.mxu1 %v4638_v53  ;;  %v4671_v53 = vld [vmem:[%s6414_s1 + $0x4ac] ss:$16 sps:$4 sm:$0xff]  }
  0xb3   : > { %2223 = vmatprep.mubr.bf16.mxu1 %v5393_v13  ;;  %v390_v13 = vld [vmem:[%s5065_s30 + $0x330] sm:$0xff] }
  0xb4   : > { %v5667_v21 = vpack.c.bf16 %v397_v10, %v390_v13  ;;  %v4678_v10 = vld [vmem:[%s6414_s1 + $0x508] ss:$16 sps:$4 sm:$0xff]  }
  0xb5   : > { %2267 = vmatpush1.bf16.msra.mxu1 %v4636_v57  ;;  %v336_v57 = vld [vmem:[%s5065_s30 + $0x180] sm:$0xff] }
  0xb6   : > { %2268 = vmatprep.subr.bf16.mxu1 %v4641_v37  ;;  %v5747_v37 = vpack.c.bf16 %v343_v50, %v336_v57  ;;  %v4696_v50 = vld [vmem:[%s6414_s1 + $0x5c8] ss:$16 sps:$4 sm:$0xff]  }
  0xb8   : > { %2224 = vmatmul.mubr.bf16.gmra.mrb[56].mxu1 %v5418_v32  ;;  %v4653_v32 = vld [vmem:[%s6414_s1 + $0x3ec] ss:$16 sps:$4 sm:$0xff]  }
  0xb9   : > { %1998 = vmatmul.mubr.bf16.gmra.mrb[24].mxu0 %v5645_v7  ;;  %2269 = vmatpush1.bf16.msra.mxu1 %v4639_v4  ;;  %v357_v4 = vld [vmem:[%s5065_s30 + $0x228] sm:$0xff] }
  0xba   : > { %2007 = vmatprep.mubr.bf16.mxu0 %v5650_v8  ;;  %2270 = vmatprep.subr.bf16.mxu1 %v4644_v5  ;;  %v4705_v5 = vld [vmem:[%s6416_s3] ss:$8 sps:$4 sm:$0xff]   ;;  %v5774_v13 = vpack.c.bf16 %v357_v4, %v350_v44  ;;  %v4726_v4 = vld [vmem:[%s6416_s3 + $0x70] ss:$8 sps:$4 sm:$0xff]  }
  0xbb   : > { %2233 = vmatprep.mubr.bf16.mxu1 %v5437_v47  ;;  %v4873_v47 = vmov 0   ;;  %v4723_v44 = vld [vmem:[%s6416_s3 + $0x60] ss:$8 sps:$4 sm:$0xff]  }
  0xbd   : > { %2271 = vmatpush1.bf16.msra.mxu1 %v4642_v9  ;;  %v4707_v9 = vld [vmem:[%s6416_s3 + $0x4] ss:$8 sps:$4 sm:$0xff]  }
  0xbe   : > { %2272 = vmatprep.subr.bf16.mxu1 %v4647_v12  ;;  %3203 = vmatprep.subr.bf16.mxu0 %v4707_v9  ;;  %v4681_v12 = vld [vmem:[%s6414_s1 + $0x528] ss:$16 sps:$4 sm:$0xff]  }
  0xbf   : > { %v4729_v9 = vld [vmem:[%s6416_s3 + $0x80] ss:$8 sps:$4 sm:$0xff]  }
  0xc0   : > { %2234 = vmatmul.mubr.bf16.gmra.mrb[60].mxu1 %v5458_v62  ;;  %v4654_v62 = vld [vmem:[%s6414_s1 + $0x408] ss:$16 sps:$4 sm:$0xff]  }
  0xc1   : > { %2008 = vmatmul.mubr.bf16.gmra.mrb[28].mxu0 %v5667_v21  ;;  %2273 = vmatpush1.bf16.msra.mxu1 %v4645_v59  ;;  %v4708_v59 = vld [vmem:[%s6416_s3 + $0x10] ss:$8 sps:$4 sm:$0xff]  }
  0xc2   : > { %2050 = vmatprep.mubr.bf16.mxu0 %v4873_v47  ;;  %2274 = vmatprep.subr.bf16.mxu1 %v4653_v32  ;;  %v4710_v32 = vld [vmem:[%s6416_s3 + $0x14] ss:$8 sps:$4 sm:$0xff]  }
  0xc3   : > { %2276 = vmatprep.mubr.bf16.mxu1 %v5088_v55  ;;  %v4657_v55 = vld [vmem:[%s6414_s1 + $0x428] ss:$16 sps:$4 sm:$0xff]  }
  0xc5   : > { %2275 = vmatpush1.bf16.msra.mxu1 %v4651_v2  ;;  %v364_v2 = vld [vmem:[%s5065_s30 + $0x260] sm:$0xff] }
  0xc6   : > { %2357 = vmatprep.subr.bf16.mxu1 %v4656_v30  ;;  %v5804_v30 = vpack.c.bf16 %v371_v22, %v364_v2 }
  0xc8   : > { %2277 = vmatmul.mubr.bf16.vlgmr.msra.gmra.mrb[32].mxu1 %v5157_v18  ;;  %v4660_v18 = vld [vmem:[%s6414_s1 + $0x448] ss:$16 sps:$4 sm:$0xff]  }
  0xc9   : > { %3998 = vmatmul.mubr.msk.bf16.vlgmr.msra.gmra.mrb[0].mxu0 %vm1654_vm0, %v5684_v54  ;;  %2358 = vmatpush1.bf16.msra.mxu1 %v4654_v62  ;;  %v4684_v62 = vld [vmem:[%s6414_s1 + $0x548] ss:$16 sps:$4 sm:$0xff]  }
  0xca   : > { %2060 = vmatprep.mubr.bf16.mxu0 %v4873_v47  ;;  %2359 = vmatprep.subr.bf16.mxu1 %v4659_v31  ;;  %v4711_v31 = vld [vmem:[%s6416_s3 + $0x20] ss:$8 sps:$4 sm:$0xff]  }
  0xcb   : > { %2286 = vmatprep.mubr.bf16.mxu1 %v5172_v25  ;;  %v4663_v25 = vld [vmem:[%s6414_s1 + $0x468] ss:$16 sps:$4 sm:$0xff]   ;;  %3204 = vmatpush1.bf16.msra.mxu0 %v4705_v5  ;;  %v4731_v5 = vld [vmem:[%s6416_s3 + $0x84] ss:$8 sps:$4 sm:$0xff]  }
  0xcc   : > { %3205 = vmatprep.subr.bf16.mxu0 %v4710_v32  ;;  %v4746_v32 = vld [vmem:[%s6416_s3 + $0xd4] ss:$8 sps:$4 sm:$0xff]  }
  0xcd   : > { %2360 = vmatpush1.bf16.msra.mxu1 %v4657_v55  ;;  %v4716_v55 = vld [vmem:[%s6416_s3 + $0x34] ss:$8 sps:$4 sm:$0xff]  }
  0xce   : > { %2361 = vmatprep.subr.bf16.mxu1 %v4662_v26  ;;  %v385_v26 = vld [vmem:[%s5065_s30 + $0x308] sm:$0xff] }
  0xcf   : > { %3206 = vmatpush1.bf16.msra.mxu0 %v4708_v59 }
  0xd0   : > { %2287 = vmatmul.mubr.bf16.gmra.mrb[36].mxu1 %v5201_v38  ;;  %v4666_v38 = vld [vmem:[%s6414_s1 + $0x488] ss:$16 sps:$4 sm:$0xff]  }
  0xd1   : > { %3999 = vmatmul.mubr.msk.bf16.gmra.mrb[4].mxu0 %vm1654_vm0, %v5705_v39  ;;  %2362 = vmatpush1.bf16.msra.mxu1 %v4660_v18  ;;  %v4714_v18 = vld [vmem:[%s6416_s3 + $0x30] ss:$8 sps:$4 sm:$0xff]  }
  0xd2   : > { %2070 = vmatprep.mubr.bf16.mxu0 %v4873_v47  ;;  %2363 = vmatprep.subr.bf16.mxu1 %v4665_v17  ;;  %v5834_v17 = vpack.c.bf16 %v385_v26, %v378_v36 }
  0xd3   : > { %2296 = vmatprep.mubr.bf16.mxu1 %v5216_v45  ;;  %v4669_v45 = vld [vmem:[%s6414_s1 + $0x4a8] ss:$16 sps:$4 sm:$0xff]  }
  0xd5   : > { %2364 = vmatpush1.bf16.msra.mxu1 %v4663_v25  ;;  %v4690_v25 = vld [vmem:[%s6414_s1 + $0x588] ss:$16 sps:$4 sm:$0xff]  }
  0xd6   : > { %2365 = vmatprep.subr.bf16.mxu1 %v4668_v49  ;;  %v4717_v49 = vld [vmem:[%s6416_s3 + $0x40] ss:$8 sps:$4 sm:$0xff]  }
  0xd8   : > { %2297 = vmatmul.mubr.bf16.gmra.mrb[40].mxu1 %v5245_v60  ;;  %v4672_v60 = vld [vmem:[%s6414_s1 + $0x4c8] ss:$16 sps:$4 sm:$0xff]  }
  0xd9   : > { %4000 = vmatmul.mubr.msk.bf16.gmra.mrb[8].mxu0 %vm1654_vm0, %v5726_v41  ;;  %2366 = vmatpush1.bf16.msra.mxu1 %v4666_v38  ;;  %v392_v38 = vld [vmem:[%s5065_s30 + $0x340] sm:$0xff] }
  0xda   : > { %2080 = vmatprep.mubr.bf16.mxu0 %v4873_v47  ;;  %2367 = vmatprep.subr.bf16.mxu1 %v4671_v53  ;;  %v399_v53 = vld [vmem:[%s5065_s30 + $0x378] sm:$0xff] }
  0xdb   : > { %2306 = vmatprep.mubr.bf16.mxu1 %v5260_v3  ;;  %v4675_v3 = vld [vmem:[%s6414_s1 + $0x4e8] ss:$16 sps:$4 sm:$0xff]   ;;  %v5864_v57 = vpack.c.bf16 %v399_v53, %v392_v38 }
  0xdd   : > { %2368 = vmatpush1.bf16.msra.mxu1 %v4669_v45  ;;  %v4722_v45 = vld [vmem:[%s6416_s3 + $0x54] ss:$8 sps:$4 sm:$0xff]  }
  0xde   : > { %2369 = vmatprep.subr.bf16.mxu1 %v4674_v58  ;;  %v4701_v58 = vld [vmem:[%s6414_s1 + $0x5ec] ss:$16 sps:$4 sm:$0xff]  }
  0xe0   : > { %2307 = vmatmul.mubr.bf16.gmra.mrb[44].mxu1 %v5289_v16  ;;  %v4680_v16 = vld [vmem:[%s6414_s1 + $0x50c] ss:$16 sps:$4 sm:$0xff]  }
  0xe1   : > { %4001 = vmatmul.mubr.msk.bf16.gmra.mrb[12].mxu0 %vm1654_vm0, %v5747_v37  ;;  %2370 = vmatpush1.bf16.msra.mxu1 %v4672_v60  ;;  %v4725_v60 = vld [vmem:[%s6416_s3 + $0x64] ss:$8 sps:$4 sm:$0xff]  }
  0xe2   : > { %2090 = vmatprep.mubr.bf16.mxu0 %v4873_v47  ;;  %2371 = vmatprep.subr.bf16.mxu1 %v4677_v0  ;;  %v4699_v0 = vld [vmem:[%s6414_s1 + $0x5e8] ss:$16 sps:$4 sm:$0xff]  }
  0xe3   : > { %2316 = vmatprep.mubr.bf16.mxu1 %v5304_v27  ;;  %v4683_v27 = vld [vmem:[%s6414_s1 + $0x52c] ss:$16 sps:$4 sm:$0xff]  }
  0xe5   : > { %2372 = vmatpush1.bf16.msra.mxu1 %v4675_v3  ;;  %v4704_v3 = vld [vmem:[%s6414_s1 + $0x60c] ss:$16 sps:$4 sm:$0xff]  }
  0xe6   : > { %2373 = vmatprep.subr.bf16.mxu1 %v4680_v16  ;;  %v4734_v16 = vld [vmem:[%s6416_s3 + $0x94] ss:$8 sps:$4 sm:$0xff]  }
  0xe8   : > { %2317 = vmatmul.mubr.bf16.gmra.mrb[48].mxu1 %v5333_v42  ;;  %v4713_v42 = vld [vmem:[%s6416_s3 + $0x24] ss:$8 sps:$4 sm:$0xff]  }
  0xe9   : > { %4002 = vmatmul.mubr.msk.bf16.gmra.mrb[16].mxu0 %vm1654_vm0, %v5774_v13  ;;  %2374 = vmatpush1.bf16.msra.mxu1 %v4678_v10  ;;  %v4732_v10 = vld [vmem:[%s6416_s3 + $0x90] ss:$8 sps:$4 sm:$0xff]  }
  0xea   : > { %2100 = vmatprep.mubr.bf16.mxu0 %v4873_v47  ;;  %2375 = vmatprep.subr.bf16.mxu1 %v4683_v27  ;;  %v4740_v27 = vld [vmem:[%s6416_s3 + $0xb4] ss:$8 sps:$4 sm:$0xff]  }
  0xeb   : > { %2326 = vmatprep.mubr.bf16.mxu1 %v5348_v51  ;;  %3207 = vmatprep.subr.bf16.mxu0 %v4713_v42  ;;  %v4689_v51 = vld [vmem:[%s6414_s1 + $0x56c] ss:$16 sps:$4 sm:$0xff]  }
  0xec   : > { %3208 = vmatpush1.bf16.msra.mxu0 %v4711_v31 }
  0xed   : > { %2376 = vmatpush1.bf16.msra.mxu1 %v4681_v12  ;;  %3209 = vmatprep.subr.bf16.mxu0 %v4716_v55  ;;  %v4738_v12 = vld [vmem:[%s6416_s3 + $0xb0] ss:$8 sps:$4 sm:$0xff]  }
  0xee   : > { %2377 = vmatprep.subr.bf16.mxu1 %v4686_v28  ;;  %v4747_v28 = vld [vmem:[%s6416_s3 + $0xe0] ss:$8 sps:$4 sm:$0xff]  }
  0xf0   : > { %2327 = vmatmul.mubr.bf16.gmra.mrb[52].mxu1 %v5377_v6  ;;  %v4692_v6 = vld [vmem:[%s6414_s1 + $0x58c] ss:$16 sps:$4 sm:$0xff]   ;;  %3210 = vmatpush1.bf16.msra.mxu0 %v4714_v18 }
  0xf1   : > { %4003 = vmatmul.mubr.msk.bf16.gmra.mrb[20].mxu0 %vm1654_vm0, %v5804_v30  ;;  %2378 = vmatpush1.bf16.msra.mxu1 %v4684_v62 }
  0xf2   : > { %2110 = vmatprep.mubr.bf16.mxu0 %v4873_v47  ;;  %2379 = vmatprep.subr.bf16.mxu1 %v4689_v51  ;;  %v4752_v51 = vld [vmem:[%s6416_s3 + $0xf4] ss:$8 sps:$4 sm:$0xff]  }
  0xf3   : > { %2336 = vmatprep.mubr.bf16.mxu1 %v5395_v14  ;;  %v4695_v14 = vld [vmem:[%s6414_s1 + $0x5ac] ss:$16 sps:$4 sm:$0xff]   ;;  %3211 = vmatprep.subr.bf16.mxu0 %v4719_v46 }
  0xf4   : > { %3212 = vmatpush1.bf16.msra.mxu0 %v4717_v49 }
  0xf5   : > { %2380 = vmatpush1.bf16.msra.mxu1 %v4687_v15  ;;  %3213 = vmatprep.subr.bf16.mxu0 %v4722_v45 }
  0xf6   : > { %2381 = vmatprep.subr.bf16.mxu1 %v4692_v6 }
  0xf8   : > { %2337 = vmatmul.mubr.bf16.gmra.mrb[56].mxu1 %v5420_v33  ;;  %v4698_v33 = vld [vmem:[%s6414_s1 + $0x5cc] ss:$16 sps:$4 sm:$0xff]  }
  0xf9   : > { %4004 = vmatmul.mubr.msk.bf16.gmra.mrb[24].mxu0 %vm1654_vm0, %v5834_v17  ;;  %2382 = vmatpush1.bf16.msra.mxu1 %v4690_v25 }
  0xfa   : > { %2120 = vmatprep.mubr.bf16.mxu0 %v4873_v47  ;;  %2383 = vmatprep.subr.bf16.mxu1 %v4695_v14 }
  0xfb   : > { %2346 = vmatprep.mubr.bf16.mxu1 %v5439_v48  ;;  %v4720_v48 = vld [vmem:[%s6416_s3 + $0x50] ss:$8 sps:$4 sm:$0xff]  }
  0xfc   : > { %3214 = vmatpush1.bf16.msra.mxu0 %v4720_v48  ;;  %v4755_v48 = vld [vmem:[%s6416_s3 + $0x104] ss:$8 sps:$4 sm:$0xff]  }
  0xfd   : > { %2384 = vmatpush1.bf16.msra.mxu1 %v4693_v24  ;;  %3215 = vmatprep.subr.bf16.mxu0 %v4725_v60 }
  0xfe   : > { %2385 = vmatprep.subr.bf16.mxu1 %v4698_v33 }
 0x100   : > { %2347 = vmatmul.mubr.bf16.gmra.mrb[60].mxu1 %v5460_v63  ;;  %v4728_v63 = vld [vmem:[%s6416_s3 + $0x74] ss:$8 sps:$4 sm:$0xff]   ;;  %3216 = vmatpush1.bf16.msra.mxu0 %v4723_v44 }
 0x101   : > { %4005 = vmatmul.mubr.msk.bf16.gmra.mrb[28].mxu0 %vm1654_vm0, %v5864_v57  ;;  %2386 = vmatpush1.bf16.msra.mxu1 %v4696_v50 }
 0x102   : > { %2389 = vmatprep.mubr.bf16.mxu1 %v5479_v11  ;;  %2387 = vmatprep.subr.bf16.mxu1 %v4701_v58  ;;  %v4702_v11 = vld [vmem:[%s6414_s1 + $0x608] ss:$16 sps:$4 sm:$0xff]  }
 0x103   : > { %3217 = vmatprep.subr.bf16.mxu0 %v4728_v63 }
 0x104   : > { %3218 = vmatpush1.bf16.msra.mxu0 %v4726_v4 }
 0x105   : > { %2388 = vmatpush1.bf16.msra.mxu1 %v4699_v0  ;;  %3219 = vmatprep.subr.bf16.mxu0 %v4731_v5 }
 0x106   : > { %2470 = vmatprep.subr.bf16.mxu1 %v4704_v3 }
 0x108   : > { %2390 = vmatmul.mubr.bf16.vlgmr.msra.gmra.mrb[32].mxu1 %v5492_v23  ;;  %3220 = vmatpush1.bf16.msra.mxu0 %v4729_v9  ;;  %v4737_v23 = vld [vmem:[%s6416_s3 + $0xa4] ss:$8 sps:$4 sm:$0xff]  }
 0x109   : > { %2471 = vmatpush1.bf16.msra.mxu1 %v4702_v11  ;;  %2399 = vmatprep.mubr.bf16.mxu1 %v5497_v29  ;;  %v4735_v29 = vld [vmem:[%s6416_s3 + $0xa0] ss:$8 sps:$4 sm:$0xff]  }
 0x10a   : > { %3221 = vmatprep.subr.bf16.mxu0 %v4734_v16 }
 0x10c   : > { %3222 = vmatpush1.bf16.msra.mxu0 %v4732_v10 }
 0x10d   : > { %3223 = vmatprep.subr.bf16.mxu0 %v4737_v23 }
 0x110   : > { %2400 = vmatmul.mubr.bf16.gmra.mrb[36].mxu1 %v5516_v40  ;;  %3224 = vmatpush1.bf16.msra.mxu0 %v4735_v29  ;;  %v4743_v40 = vld [vmem:[%s6416_s3 + $0xc4] ss:$8 sps:$4 sm:$0xff]  }
 0x111   : > { %2409 = vmatprep.mubr.bf16.mxu1 %v5521_v43  ;;  %3225 = vmatprep.subr.bf16.mxu0 %v4740_v27  ;;  %v4741_v43 = vld [vmem:[%s6416_s3 + $0xc0] ss:$8 sps:$4 sm:$0xff]  }
 0x114   : > { %3226 = vmatpush1.bf16.msra.mxu0 %v4738_v12 }
 0x115   : > { %3227 = vmatprep.subr.bf16.mxu0 %v4743_v40 }
 0x118   : > { %2410 = vmatmul.mubr.bf16.gmra.mrb[40].mxu1 %v5546_v61  ;;  %3228 = vmatpush1.bf16.msra.mxu0 %v4741_v43  ;;  %v4744_v61 = vld [vmem:[%s6416_s3 + $0xd0] ss:$8 sps:$4 sm:$0xff]  }
 0x119   : > { %2419 = vmatprep.mubr.bf16.mxu1 %v5551_v1  ;;  %3229 = vmatprep.subr.bf16.mxu0 %v4746_v32  ;;  %v4749_v1 = vld [vmem:[%s6416_s3 + $0xe4] ss:$8 sps:$4 sm:$0xff]  }
 0x11b   : > { %v5936_v59 = vpop.f32.mrb[0].mxu1 }
 0x11c   : > { %v5941_v2 = vpop.f32.mrb[1].mxu1  ;;  %3230 = vmatpush1.bf16.msra.mxu0 %v4744_v61 }
 0x11d   : > { %v5943_v22 = vpop.f32.mrb[2].mxu1  ;;  %3231 = vmatprep.subr.bf16.mxu0 %v4749_v1 }
 0x11e   : > { %v5945_v42 = vpop.f32.mrb[3].mxu1 }
 0x120   : > { %2420 = vmatmul.mubr.bf16.gmra.mrb[44].mxu1 %v5570_v19  ;;  %3232 = vmatpush1.bf16.msra.mxu0 %v4747_v28  ;;  %v4750_v19 = vld [vmem:[%s6416_s3 + $0xf0] ss:$8 sps:$4 sm:$0xff]  }
 0x121   : > { %2429 = vmatprep.mubr.bf16.mxu1 %v5575_v20  ;;  %3233 = vmatprep.subr.bf16.mxu0 %v4752_v51 }
 0x123   : > { %v5958_v62 = vpop.f32.mrb[4].mxu1 }
 0x124   : > { %v5963_v31 = vpop.f32.mrb[5].mxu1  ;;  %3234 = vmatpush1.bf16.msra.mxu0 %v4750_v19 }
 0x125   : > { %v5965_v55 = vpop.f32.mrb[6].mxu1  ;;  %3316 = vmatprep.subr.bf16.mxu0 %v4755_v48  ;;  %v4753_v48 = vld [vmem:[%s6416_s3 + $0x100] ss:$8 sps:$4 sm:$0xff]  }
 0x126   : > { %v5967_v15 = vpop.f32.mrb[7].mxu1 }
 0x128   : > { %2430 = vmatmul.mubr.bf16.gmra.mrb[48].mxu1 %v5594_v34 }
 0x129   : > { %2439 = vmatprep.mubr.bf16.mxu1 %v5599_v35 }
 0x12b   : > { %v5974_v20 = vpop.f32.mrb[8].mxu1 }
 0x12c   : > { %v5976_v36 = vpop.f32.mrb[9].mxu1 }
 0x12d   : > { %v5978_v26 = vpop.f32.mrb[10].mxu1 }
 0x12e   : > { %v5980_v6 = vpop.f32.mrb[11].mxu1 }
 0x130   : > { %2440 = vmatmul.mubr.bf16.gmra.mrb[52].mxu1 %v5618_v52 }
 0x131   : > { %2449 = vmatprep.mubr.bf16.mxu1 %v5626_v56 }
 0x133   : > { %v5984_v18 = vpop.f32.mrb[12].mxu1 }
 0x134   : > { %v5986_v25 = vpop.f32.mrb[13].mxu1 }
 0x135   : > { %v5988_v34 = vpop.f32.mrb[14].mxu1 }
 0x136   : > { %v5990_v35 = vpop.f32.mrb[15].mxu1 }
 0x138   : > { %2450 = vmatmul.mubr.bf16.gmra.mrb[56].mxu1 %v5645_v7 }
 0x139   : > { %2459 = vmatprep.mubr.bf16.mxu1 %v5650_v8 }
 0x13b   : > { %v5994_v14 = vpop.f32.mrb[16].mxu1 }
 0x13c   : > { %v5996_v46 = vpop.f32.mrb[17].mxu1 }
 0x13d   : > { %v5998_v24 = vpop.f32.mrb[18].mxu1 }
 0x13e   : > { %v6000_v52 = vpop.f32.mrb[19].mxu1 }
 0x140   : > { %2460 = vmatmul.mubr.bf16.gmra.mrb[60].mxu1 %v5667_v21 }
 0x141   : > { %2502 = vmatprep.mubr.bf16.mxu1 %v4873_v47 }
 0x143   : > { %v6004_v56 = vpop.f32.mrb[20].mxu1 }
 0x144   : > { %v6006_v49 = vpop.f32.mrb[21].mxu1 }
 0x145   : > { %v6008_v38 = vpop.f32.mrb[22].mxu1 }
 0x146   : > { %v6010_v7 = vpop.f32.mrb[23].mxu1 }
 0x148   : > { %4006 = vmatmul.mubr.msk.bf16.vlgmr.msra.gmra.mrb[32].mxu1 %vm1654_vm0, %v5684_v54 }
 0x149   : > { %2512 = vmatprep.mubr.bf16.mxu1 %v4873_v47 }
 0x14b   : > { %v6015_v8 = vpop.f32.mrb[24].mxu1 }
 0x14c   : > { %v6017_v53 = vpop.f32.mrb[25].mxu1 }
 0x14d   : > { %v6019_v21 = vpop.f32.mrb[26].mxu1 }
 0x14e   : > { %v6021_v45 = vpop.f32.mrb[27].mxu1 }
 0x150   : > { %4007 = vmatmul.mubr.msk.bf16.gmra.mrb[36].mxu1 %vm1654_vm0, %v5705_v39  ;;  %v654_v39 = vlaneseq }
 0x151   : > { %2522 = vmatprep.mubr.bf16.mxu1 %v4873_v47 }
 0x153   : > { %v6026_v33 = vpop.f32.mrb[28].mxu1 }
 0x154   : > { %v6028_v50 = vpop.f32.mrb[29].mxu1 }
 0x155   : > { %v6030_v54 = vpop.f32.mrb[30].mxu1 }
 0x156   : > { %v6032_v58 = vpop.f32.mrb[31].mxu1 }
 0x158   : > { %4008 = vmatmul.mubr.msk.bf16.gmra.mrb[40].mxu1 %vm1654_vm0, %v5726_v41  ;;  %v6054_v41 = vshrl.u32 %v654_v39, 7 }
 0x159   : > { %2532 = vmatprep.mubr.bf16.mxu1 %v4873_v47 }
 0x160   : > { %4009 = vmatmul.mubr.msk.bf16.gmra.mrb[44].mxu1 %vm1654_vm0, %v5747_v37  ;;  %v6057_v37 = vsub.s32 0, %v6054_v41 }
 0x161   : > { %2542 = vmatprep.mubr.bf16.mxu1 %v4873_v47 }
 0x168   : > { %4010 = vmatmul.mubr.msk.bf16.gmra.mrb[48].mxu1 %vm1654_vm0, %v5774_v13  ;;  %v6062_v13 = vld [vmem:[%s6415_s2] sm:$0xf] }
 0x169   : > { %2552 = vmatprep.mubr.bf16.mxu1 %v4873_v47 }
 0x170   : > { %4011 = vmatmul.mubr.msk.bf16.gmra.mrb[52].mxu1 %vm1654_vm0, %v5804_v30  ;;  %v6065_v30 = vsub.s32 1, %v6054_v41 }
 0x171   : > { %2562 = vmatprep.mubr.bf16.mxu1 %v4873_v47 }
 0x178   : > { %4012 = vmatmul.mubr.msk.bf16.gmra.mrb[56].mxu1 %vm1654_vm0, %v5834_v17  ;;  %v6073_v17 = vrot.slane %v6062_v13, %v6065_v30 }
 0x179   : > { %2572 = vmatprep.mubr.bf16.mxu1 %v4873_v47  ;;  %v6069_v47 = vrot.slane %v6062_v13, %v6057_v37 }
 0x17a   : > { %v1716_v60 = vadd.f32 %v5941_v2, %v6073_v17  ;;  %v1720_v11 = vadd.f32 %v5945_v42, %v6073_v17  ;;  %v1726_v32 = vadd.f32 %v5963_v31, %v6073_v17  ;;  %v4758_v31 = vld [vmem:[%s6416_s3 + $0x114] ss:$8 sps:$4 sm:$0xff]  }
 0x17b   : > { %v1718_v3 = vadd.f32 %v5943_v22, %v6069_v47  ;;  %v1724_v40 = vadd.f32 %v5958_v62, %v6069_v47  ;;  %v1728_v1 = vadd.f32 %v5965_v55, %v6069_v47  ;;  %v1730_v62 = vadd.f32 %v5967_v15, %v6073_v17  ;;  %v4756_v15 = vld [vmem:[%s6416_s3 + $0x110] ss:$8 sps:$4 sm:$0xff]  }
 0x180   : > { %4013 = vmatmul.mubr.msk.bf16.gmra.mrb[60].mxu1 %vm1654_vm0, %v5864_v57  ;;  %v1714_v57 = vadd.f32 %v5936_v59, %v6069_v47 }
 0x19c   : > { %v2052_v0 = vpop.f32.mrb[0].mxu0 }
 0x19d   : > { %v4082_v44 = vadd.f32 %v2052_v0, %v1714_v57  ;;  %v2054_v63 = vpop.f32.mrb[1].mxu0 }
 0x19e   : > { %v4084_v4 = vadd.f32 %v2054_v63, %v1716_v60  ;;  %v2056_v5 = vpop.f32.mrb[2].mxu0 }
 0x19f   : > { %v2647_v9 = vmul.f32 0.2, %v4082_v44  ;;  %v4086_v16 = vadd.f32 %v2056_v5, %v1718_v3  ;;  %v2058_v10 = vpop.f32.mrb[3].mxu0  ;;  %vm2583_vm1 = vcmp.gt.f32.partialorder %v4082_v44, 0.0  ;;  %v1734_v5 = vadd.f32 %v5974_v20, %v6069_v47  ;;  %v4759_v20 = vld [vmem:[%s6416_s3 + $0x120] ss:$8 sps:$4 sm:$0xff]  }
 0x1a0   : > { %v2648_v23 = vmul.f32 0.2, %v4084_v4  ;;  %v4088_v29 = vadd.f32 %v2058_v10, %v1720_v11  ;;  %vm2584_vm2 = vcmp.gt.f32.partialorder %v4084_v4, 0.0  ;;  %v1736_v10 = vadd.f32 %v5976_v36, %v6073_v17 }
 0x1a1   : > { %vm2587_vm3 = vcmp.gt.f32.partialorder %v4086_v16, 0.0  ;;  %v2651_v27 = vmul.f32 0.2, %v4086_v16  ;;  %v2711_v43 = vsel %vm2583_vm1, %v4082_v44, %v2647_v9 }
 0x1a2   : > { %vm2588_vm4 = vcmp.gt.f32.partialorder %v4088_v29, 0.0  ;;  %v2652_v12 = vmul.f32 0.2, %v4088_v29  ;;  %v2712_v42 = vsel %vm2584_vm2, %v4084_v4, %v2648_v23  ;;  %v4761_v4 = vld [vmem:[%s6416_s3 + $0x124] ss:$8 sps:$4 sm:$0xff]  }
 0x1a3   : > { %v2715_v59 = vsel %vm2587_vm3, %v4086_v16, %v2651_v27 }
 0x1a4   : > { %v2775_v2 = vpack.c.bf16 %v2715_v59, %v2711_v43  ;;  %v2062_v22 = vpop.f32.mrb[4].mxu0  ;;  %v2716_v61 = vsel %vm2588_vm4, %v4088_v29, %v2652_v12 }
 0x1a5   : > { %v4090_v28 = vadd.f32 %v2062_v22, %v1724_v40  ;;  %v2064_v51 = vpop.f32.mrb[5].mxu0  ;;  %v2776_v19 = vpack.c.bf16 %v2716_v61, %v2712_v42  ;;  %v1738_v40 = vadd.f32 %v5978_v26, %v6069_v47  ;;  %v4764_v42 = vld [vmem:[%s6416_s3 + $0x134] ss:$8 sps:$4 sm:$0xff]  }
 0x1a6   : > { %v4092_v39 = vadd.f32 %v2064_v51, %v1726_v32  ;;  %v2066_v57 = vpop.f32.mrb[6].mxu0 }
 0x1a7   : > { %v2655_v60 = vmul.f32 0.2, %v4090_v28  ;;  %v4094_v0 = vadd.f32 %v2066_v57, %v1728_v1  ;;  %v2068_v3 = vpop.f32.mrb[7].mxu0  ;;  %3235 = vmatprep.mubr.bf16.mxu0 %v2776_v19  ;;  %vm2591_vm5 = vcmp.gt.f32.partialorder %v4090_v28, 0.0 }
 0x1a8   : > { %v2656_v55 = vmul.f32 0.2, %v4092_v39  ;;  %v4096_v44 = vadd.f32 %v2068_v3, %v1730_v62  ;;  %3236 = vmatmul.mubr.bf16.vlgmr.msra.gmra.mrb[32].mxu0 %v2775_v2  ;;  %vm2592_vm6 = vcmp.gt.f32.partialorder %v4092_v39, 0.0  ;;  %v1740_v2 = vadd.f32 %v5980_v6, %v6073_v17  ;;  %v4762_v6 = vld [vmem:[%s6416_s3 + $0x130] ss:$8 sps:$4 sm:$0xff]  }
 0x1a9   : > { %vm2595_vm7 = vcmp.gt.f32.partialorder %v4094_v0, 0.0  ;;  %v2659_v63 = vmul.f32 0.2, %v4094_v0  ;;  %3317 = vmatpush1.bf16.msra.mxu0 %v4753_v48  ;;  %v2719_v9 = vsel %vm2591_vm5, %v4090_v28, %v2655_v60  ;;  %v4767_v62 = vld [vmem:[%s6416_s3 + $0x144] ss:$8 sps:$4 sm:$0xff]   ;;  %v1746_v60 = vadd.f32 %v5986_v25, %v6073_v17 }
 0x1aa   : > { %vm2596_vm8 = vcmp.gt.f32.partialorder %v4096_v44, 0.0  ;;  %v2660_v11 = vmul.f32 0.2, %v4096_v44  ;;  %3318 = vmatprep.subr.bf16.mxu0 %v4758_v31  ;;  %v2720_v29 = vsel %vm2592_vm6, %v4092_v39, %v2656_v55  ;;  %v1744_v39 = vadd.f32 %v5984_v18, %v6069_v47  ;;  %v4765_v18 = vld [vmem:[%s6416_s3 + $0x140] ss:$8 sps:$4 sm:$0xff]  }
 0x1ab   : > { %v2723_v16 = vsel %vm2595_vm7, %v4094_v0, %v2659_v63  ;;  %v1748_v63 = vadd.f32 %v5988_v34, %v6069_v47 }
 0x1ac   : > { %v2072_v23 = vpop.f32.mrb[8].mxu0  ;;  %v2724_v27 = vsel %vm2596_vm8, %v4096_v44, %v2660_v11  ;;  %v2779_v12 = vpack.c.bf16 %v2723_v16, %v2719_v9  ;;  %v4770_v16 = vld [vmem:[%s6416_s3 + $0x154] ss:$8 sps:$4 sm:$0xff]  }
 0x1ad   : > { %v4098_v43 = vadd.f32 %v2072_v23, %v1734_v5  ;;  %v2074_v59 = vpop.f32.mrb[9].mxu0  ;;  %v2780_v32 = vpack.c.bf16 %v2724_v27, %v2720_v29  ;;  %3319 = vmatpush1.bf16.msra.mxu0 %v4756_v15  ;;  %v1750_v5 = vadd.f32 %v5990_v35, %v6073_v17  ;;  %v4768_v35 = vld [vmem:[%s6416_s3 + $0x150] ss:$8 sps:$4 sm:$0xff]  }
 0x1ae   : > { %v4100_v22 = vadd.f32 %v2074_v59, %v1736_v10  ;;  %v2076_v36 = vpop.f32.mrb[10].mxu0  ;;  %3320 = vmatprep.subr.bf16.mxu0 %v4761_v4  ;;  %v1754_v59 = vadd.f32 %v5994_v14, %v6069_v47  ;;  %v4771_v14 = vld [vmem:[%s6416_s3 + $0x160] ss:$8 sps:$4 sm:$0xff]  }
 0x1af   : > { %v2663_v61 = vmul.f32 0.2, %v4098_v43  ;;  %v4102_v26 = vadd.f32 %v2076_v36, %v1738_v40  ;;  %v2078_v1 = vpop.f32.mrb[11].mxu0  ;;  %3245 = vmatprep.mubr.bf16.mxu0 %v2780_v32  ;;  %vm2599_vm9 = vcmp.gt.f32.partialorder %v4098_v43, 0.0 }
 0x1b0   : > { %v2664_v28 = vmul.f32 0.2, %v4100_v22  ;;  %v4104_v51 = vadd.f32 %v2078_v1, %v1740_v2  ;;  %3246 = vmatmul.mubr.bf16.gmra.mrb[36].mxu0 %v2779_v12  ;;  %vm2600_vm10 = vcmp.gt.f32.partialorder %v4100_v22, 0.0  ;;  %v1756_v2 = vadd.f32 %v5996_v46, %v6073_v17 }
 0x1b1   : > { %vm2603_vm11 = vcmp.gt.f32.partialorder %v4102_v26, 0.0  ;;  %v2667_v19 = vmul.f32 0.2, %v4102_v26  ;;  %3321 = vmatpush1.bf16.msra.mxu0 %v4759_v20  ;;  %v2727_v57 = vsel %vm2599_vm9, %v4098_v43, %v2663_v61  ;;  %v4773_v43 = vld [vmem:[%s6416_s3 + $0x164] ss:$8 sps:$4 sm:$0xff]  }
 0x1b2   : > { %vm2604_vm12 = vcmp.gt.f32.partialorder %v4104_v51, 0.0  ;;  %v2668_v48 = vmul.f32 0.2, %v4104_v51  ;;  %3322 = vmatprep.subr.bf16.mxu0 %v4764_v42  ;;  %v2728_v3 = vsel %vm2600_vm10, %v4100_v22, %v2664_v28 }
 0x1b3   : > { %v2731_v31 = vsel %vm2603_vm11, %v4102_v26, %v2667_v19  ;;  %v1758_v26 = vadd.f32 %v5998_v24, %v6069_v47  ;;  %v1760_v19 = vadd.f32 %v6000_v52, %v6073_v17  ;;  %v4774_v52 = vld [vmem:[%s6416_s3 + $0x170] ss:$8 sps:$4 sm:$0xff]  }
 0x1b4   : > { %v2082_v0 = vpop.f32.mrb[12].mxu0  ;;  %v2732_v55 = vsel %vm2604_vm12, %v4104_v51, %v2668_v48  ;;  %v2783_v44 = vpack.c.bf16 %v2731_v31, %v2727_v57  ;;  %v4776_v48 = vld [vmem:[%s6416_s3 + $0x174] ss:$8 sps:$4 sm:$0xff]  }
 0x1b5   : > { %v4106_v15 = vadd.f32 %v2082_v0, %v1744_v39  ;;  %v2084_v11 = vpop.f32.mrb[13].mxu0  ;;  %v2784_v4 = vpack.c.bf16 %v2732_v55, %v2728_v3  ;;  %3323 = vmatpush1.bf16.msra.mxu0 %v4762_v6  ;;  %v4779_v3 = vld [vmem:[%s6416_s3 + $0x184] ss:$8 sps:$4 sm:$0xff]   ;;  %v1764_v55 = vadd.f32 %v6004_v56, %v6069_v47  ;;  %v4777_v56 = vld [vmem:[%s6416_s3 + $0x180] ss:$8 sps:$4 sm:$0xff]  }
 0x1b6   : > { %v4108_v9 = vadd.f32 %v2084_v11, %v1746_v60  ;;  %v2086_v25 = vpop.f32.mrb[14].mxu0  ;;  %3324 = vmatprep.subr.bf16.mxu0 %v4767_v62 }
 0x1b7   : > { %v2671_v10 = vmul.f32 0.2, %v4106_v15  ;;  %v4110_v34 = vadd.f32 %v2086_v25, %v1748_v63  ;;  %v2088_v23 = vpop.f32.mrb[15].mxu0  ;;  %3255 = vmatprep.mubr.bf16.mxu0 %v2784_v4  ;;  %vm2607_vm13 = vcmp.gt.f32.partialorder %v4106_v15, 0.0 }
 0x1b8   : > { %v2672_v29 = vmul.f32 0.2, %v4108_v9  ;;  %v4112_v27 = vadd.f32 %v2088_v23, %v1750_v5  ;;  %3256 = vmatmul.mubr.bf16.gmra.mrb[40].mxu0 %v2783_v44  ;;  %vm2608_vm14 = vcmp.gt.f32.partialorder %v4108_v9, 0.0 }
 0x1b9   : > { %vm2611_vm15 = vcmp.gt.f32.partialorder %v4110_v34, 0.0  ;;  %v2675_v12 = vmul.f32 0.2, %v4110_v34  ;;  %3325 = vmatpush1.bf16.msra.mxu0 %v4765_v18  ;;  %v2735_v32 = vsel %vm2607_vm13, %v4106_v15, %v2671_v10  ;;  %v1766_v15 = vadd.f32 %v6006_v49, %v6073_v17 }
 0x1ba   : > { %vm2612_vm0 = vcmp.gt.f32.partialorder %v4112_v27, 0.0  ;;  %v2676_v40 = vmul.f32 0.2, %v4112_v27  ;;  %3326 = vmatprep.subr.bf16.mxu0 %v4770_v16  ;;  %v2736_v36 = vsel %vm2608_vm14, %v4108_v9, %v2672_v29  ;;  %v1768_v9 = vadd.f32 %v6008_v38, %v6069_v47  ;;  %v4782_v29 = vld [vmem:[%s6416_s3 + $0x194] ss:$8 sps:$4 sm:$0xff]  }
 0x1bb   : > { %v2739_v20 = vsel %vm2611_vm15, %v4110_v34, %v2675_v12  ;;  %v1770_v34 = vadd.f32 %v6010_v7, %v6073_v17  ;;  %v4780_v7 = vld [vmem:[%s6416_s3 + $0x190] ss:$8 sps:$4 sm:$0xff]  }
 0x1bc   : > { %v2092_v22 = vpop.f32.mrb[16].mxu0  ;;  %v2740_v42 = vsel %vm2612_vm0, %v4112_v27, %v2676_v40  ;;  %v2787_v61 = vpack.c.bf16 %v2739_v20, %v2735_v32  ;;  %v4785_v32 = vld [vmem:[%s6416_s3 + $0x1a4] ss:$8 sps:$4 sm:$0xff]   ;;  %v1774_v20 = vadd.f32 %v6015_v8, %v6069_v47  ;;  %v4783_v8 = vld [vmem:[%s6416_s3 + $0x1a0] ss:$8 sps:$4 sm:$0xff]  }
 0x1bd   : > { %v4114_v1 = vadd.f32 %v2092_v22, %v1754_v59  ;;  %v2094_v28 = vpop.f32.mrb[17].mxu0  ;;  %v2788_v51 = vpack.c.bf16 %v2740_v42, %v2736_v36  ;;  %3327 = vmatpush1.bf16.msra.mxu0 %v4768_v35  ;;  %v1776_v36 = vadd.f32 %v6017_v53, %v6073_v17 }
 0x1be   : > { %v4116_v6 = vadd.f32 %v2094_v28, %v1756_v2  ;;  %v2096_v46 = vpop.f32.mrb[18].mxu0  ;;  %3328 = vmatprep.subr.bf16.mxu0 %v4773_v43  ;;  %v1778_v28 = vadd.f32 %v6019_v21, %v6069_v47 }
 0x1bf   : > { %v2679_v62 = vmul.f32 0.2, %v4114_v1  ;;  %v4118_v24 = vadd.f32 %v2096_v46, %v1758_v26  ;;  %v2098_v39 = vpop.f32.mrb[19].mxu0  ;;  %3265 = vmatprep.mubr.bf16.mxu0 %v2788_v51  ;;  %vm2615_vm1 = vcmp.gt.f32.partialorder %v4114_v1, 0.0 }
 0x1c0   : > { %v2680_v57 = vmul.f32 0.2, %v4116_v6  ;;  %v4120_v31 = vadd.f32 %v2098_v39, %v1760_v19  ;;  %3266 = vmatmul.mubr.bf16.gmra.mrb[44].mxu0 %v2787_v61  ;;  %vm2616_vm2 = vcmp.gt.f32.partialorder %v4116_v6, 0.0 }
 0x1c1   : > { %vm2619_vm3 = vcmp.gt.f32.partialorder %v4118_v24, 0.0  ;;  %v2683_v60 = vmul.f32 0.2, %v4118_v24  ;;  %3329 = vmatpush1.bf16.msra.mxu0 %v4771_v14  ;;  %v2743_v44 = vsel %vm2615_vm1, %v4114_v1, %v2679_v62 }
 0x1c2   : > { %vm2620_vm4 = vcmp.gt.f32.partialorder %v4120_v31, 0.0  ;;  %v2684_v0 = vmul.f32 0.2, %v4120_v31  ;;  %3330 = vmatprep.subr.bf16.mxu0 %v4776_v48  ;;  %v2744_v4 = vsel %vm2616_vm2, %v4116_v6, %v2680_v57  ;;  %v1780_v6 = vadd.f32 %v6021_v45, %v6073_v17  ;;  %v4788_v48 = vld [vmem:[%s6416_s3 + $0x1b4] ss:$8 sps:$4 sm:$0xff]  }
 0x1c3   : > { %v2747_v63 = vsel %vm2619_vm3, %v4118_v24, %v2683_v60  ;;  %v4786_v45 = vld [vmem:[%s6416_s3 + $0x1b0] ss:$8 sps:$4 sm:$0xff]  }
 0x1c4   : > { %v2102_v11 = vpop.f32.mrb[20].mxu0  ;;  %v2748_v18 = vsel %vm2620_vm4, %v4120_v31, %v2684_v0  ;;  %v2791_v5 = vpack.c.bf16 %v2747_v63, %v2743_v44  ;;  %v1784_v0 = vadd.f32 %v6026_v33, %v6069_v47  ;;  %v1786_v44 = vadd.f32 %v6028_v50, %v6073_v17  ;;  %v4789_v33 = vld [vmem:[%s6416_s3 + $0x1c0] ss:$8 sps:$4 sm:$0xff]  }
 0x1c5   : > { %v4122_v25 = vadd.f32 %v2102_v11, %v1764_v55  ;;  %v2104_v16 = vpop.f32.mrb[21].mxu0  ;;  %v2792_v10 = vpack.c.bf16 %v2748_v18, %v2744_v4  ;;  %3331 = vmatpush1.bf16.msra.mxu0 %v4774_v52  ;;  %v4791_v52 = vld [vmem:[%s6416_s3 + $0x1c4] ss:$8 sps:$4 sm:$0xff]   ;;  %v1788_v18 = vadd.f32 %v6030_v54, %v6069_v47 }
 0x1c6   : > { %v4124_v23 = vadd.f32 %v2104_v16, %v1766_v15  ;;  %v2106_v49 = vpop.f32.mrb[22].mxu0  ;;  %3332 = vmatprep.subr.bf16.mxu0 %v4779_v3  ;;  %v1790_v16 = vadd.f32 %v6032_v58, %v6073_v17  ;;  %v4792_v58 = vld [vmem:[%s6416_s3 + $0x1d0] ss:$8 sps:$4 sm:$0xff]  }
 0x1c7   : > { %v2687_v27 = vmul.f32 0.2, %v4122_v25  ;;  %v4126_v38 = vadd.f32 %v2106_v49, %v1768_v9  ;;  %v2108_v12 = vpop.f32.mrb[23].mxu0  ;;  %3275 = vmatprep.mubr.bf16.mxu0 %v2792_v10  ;;  %vm2623_vm5 = vcmp.gt.f32.partialorder %v4122_v25, 0.0 }
 0x1c8   : > { %v2688_v35 = vmul.f32 0.2, %v4124_v23  ;;  %v4128_v40 = vadd.f32 %v2108_v12, %v1770_v34  ;;  %3276 = vmatmul.mubr.bf16.gmra.mrb[48].mxu0 %v2791_v5  ;;  %vm2624_vm6 = vcmp.gt.f32.partialorder %v4124_v23, 0.0 }
 0x1c9   : > { %vm2627_vm7 = vcmp.gt.f32.partialorder %v4126_v38, 0.0  ;;  %v2691_v43 = vmul.f32 0.2, %v4126_v38  ;;  %3333 = vmatpush1.bf16.msra.mxu0 %v4777_v56  ;;  %v2751_v2 = vsel %vm2623_vm5, %v4122_v25, %v2687_v27  ;;  %v4794_v56 = vld [vmem:[%s6416_s3 + $0x1d4] ss:$8 sps:$4 sm:$0xff]  }
 0x1ca   : > { %vm2628_vm8 = vcmp.gt.f32.partialorder %v4128_v40, 0.0  ;;  %v2692_v59 = vmul.f32 0.2, %v4128_v40  ;;  %3334 = vmatprep.subr.bf16.mxu0 %v4782_v29  ;;  %v2752_v61 = vsel %vm2624_vm6, %v4124_v23, %v2688_v35  ;;  %v4797_v27 = vld [vmem:[%s6416_s3 + $0x1e4] ss:$8 sps:$4 sm:$0xff]  }
 0x1cb   : > { %v2755_v22 = vsel %vm2627_vm7, %v4126_v38, %v2691_v43 }
 0x1cc   : > { %v2112_v42 = vpop.f32.mrb[24].mxu0  ;;  %v2756_v26 = vsel %vm2628_vm8, %v4128_v40, %v2692_v59  ;;  %v2795_v1 = vpack.c.bf16 %v2755_v22, %v2751_v2  ;;  %v4795_v59 = vld [vmem:[%s6416_s3 + $0x1e0] ss:$8 sps:$4 sm:$0xff]   ;;  %v664_v2 = vsub.s32 2, %v6054_v41  ;;  %v668_v22 = vsub.s32 3, %v6054_v41 }
 0x1cd   : > { %v4130_v51 = vadd.f32 %v2112_v42, %v1774_v20  ;;  %v2114_v14 = vpop.f32.mrb[25].mxu0  ;;  %v2796_v19 = vpack.c.bf16 %v2756_v26, %v2752_v61  ;;  %3335 = vmatpush1.bf16.msra.mxu0 %v4780_v7  ;;  %v4798_v20 = vld [vmem:[%s6416_s3 + $0x1f0] ss:$8 sps:$4 sm:$0xff]  }
 0x1ce   : > { %v4132_v46 = vadd.f32 %v2114_v14, %v1776_v36  ;;  %v2116_v53 = vpop.f32.mrb[26].mxu0  ;;  %3336 = vmatprep.subr.bf16.mxu0 %v4785_v32  ;;  %v4800_v32 = vld [vmem:[%s6416_s3 + $0x1f4] ss:$8 sps:$4 sm:$0xff]   ;;  %v6235_v36 = vrot.slane %v6062_v13, %v664_v2  ;;  %v6238_v42 = vrot.slane %v6062_v13, %v668_v22 }
 0x1cf   : > { %v2695_v62 = vmul.f32 0.2, %v4130_v51  ;;  %v4134_v21 = vadd.f32 %v2116_v53, %v1778_v28  ;;  %v2118_v24 = vpop.f32.mrb[27].mxu0  ;;  %3285 = vmatprep.mubr.bf16.mxu0 %v2796_v19  ;;  %vm2631_vm9 = vcmp.gt.f32.partialorder %v4130_v51, 0.0 }
 0x1d0   : > { %v2696_v39 = vmul.f32 0.2, %v4132_v46  ;;  %v4136_v57 = vadd.f32 %v2118_v24, %v1780_v6  ;;  %3286 = vmatmul.mubr.bf16.gmra.mrb[52].mxu0 %v2795_v1  ;;  %vm2632_vm10 = vcmp.gt.f32.partialorder %v4132_v46, 0.0 }
 0x1d1   : > { %vm2635_vm11 = vcmp.gt.f32.partialorder %v4134_v21, 0.0  ;;  %v2699_v31 = vmul.f32 0.2, %v4134_v21  ;;  %3337 = vmatpush1.bf16.msra.mxu0 %v4783_v8  ;;  %v2759_v3 = vsel %vm2631_vm9, %v4130_v51, %v2695_v62 }
 0x1d2   : > { %vm2636_vm12 = vcmp.gt.f32.partialorder %v4136_v57, 0.0  ;;  %v2700_v60 = vmul.f32 0.2, %v4136_v57  ;;  %3338 = vmatprep.subr.bf16.mxu0 %v4788_v48  ;;  %v2760_v15 = vsel %vm2632_vm10, %v4132_v46, %v2696_v39 }
 0x1d3   : > { %v2763_v55 = vsel %vm2635_vm11, %v4134_v21, %v2699_v31 }
 0x1d4   : > { %v2122_v63 = vpop.f32.mrb[28].mxu0  ;;  %v2764_v11 = vsel %vm2636_vm12, %v4136_v57, %v2700_v60  ;;  %v2799_v4 = vpack.c.bf16 %v2763_v55, %v2759_v3 }
 0x1d5   : > { %v4138_v5 = vadd.f32 %v2122_v63, %v1784_v0  ;;  %v2124_v9 = vpop.f32.mrb[29].mxu0  ;;  %v2800_v25 = vpack.c.bf16 %v2764_v11, %v2760_v15  ;;  %3339 = vmatpush1.bf16.msra.mxu0 %v4786_v45 }
 0x1d6   : > { %v4140_v10 = vadd.f32 %v2124_v9, %v1786_v44  ;;  %v2126_v50 = vpop.f32.mrb[30].mxu0  ;;  %3340 = vmatprep.subr.bf16.mxu0 %v4791_v52 }
 0x1d7   : > { %v2703_v34 = vmul.f32 0.2, %v4138_v5  ;;  %v4142_v54 = vadd.f32 %v2126_v50, %v1788_v18  ;;  %v2128_v47 = vpop.f32.mrb[31].mxu0  ;;  %3295 = vmatprep.mubr.bf16.mxu0 %v2800_v25  ;;  %vm2639_vm13 = vcmp.gt.f32.partialorder %v4138_v5, 0.0 }
 0x1d8   : > { %v2704_v23 = vmul.f32 0.2, %v4140_v10  ;;  %v4144_v49 = vadd.f32 %v2128_v47, %v1790_v16  ;;  %3296 = vmatmul.mubr.bf16.gmra.mrb[56].mxu0 %v2799_v4  ;;  %vm2640_vm14 = vcmp.gt.f32.partialorder %v4140_v10, 0.0 }
 0x1d9   : > { %vm2643_vm15 = vcmp.gt.f32.partialorder %v4142_v54, 0.0  ;;  %v2707_v29 = vmul.f32 0.2, %v4142_v54  ;;  %3341 = vmatpush1.bf16.msra.mxu0 %v4789_v33  ;;  %v2767_v38 = vsel %vm2639_vm13, %v4138_v5, %v2703_v34 }
 0x1da   : > { %vm2644_vm0 = vcmp.gt.f32.partialorder %v4144_v49, 0.0  ;;  %v2708_v17 = vmul.f32 0.2, %v4144_v49  ;;  %3342 = vmatprep.subr.bf16.mxu0 %v4794_v56  ;;  %v2768_v35 = vsel %vm2640_vm14, %v4140_v10, %v2704_v23 }
 0x1db   : > { %v2771_v12 = vsel %vm2643_vm15, %v4142_v54, %v2707_v29 }
 0x1dc   : > { %v2772_v40 = vsel %vm2644_vm0, %v4144_v49, %v2708_v17  ;;  %v2803_v43 = vpack.c.bf16 %v2771_v12, %v2767_v38 }
 0x1dd   : > { %v2804_v7 = vpack.c.bf16 %v2772_v40, %v2768_v35  ;;  %3343 = vmatpush1.bf16.msra.mxu0 %v4792_v58 }
 0x1de   : > { %3344 = vmatprep.subr.bf16.mxu0 %v4797_v27 }
 0x1df   : > { %3305 = vmatprep.mubr.bf16.mxu0 %v2804_v7 }
 0x1e0   : > { %3306 = vmatmul.mubr.bf16.gmra.mrb[60].mxu0 %v2803_v43 }
 0x1e1   : > { %3345 = vmatpush1.bf16.msra.mxu0 %v4795_v59 }
 0x1e2   : > { %3346 = vmatprep.subr.bf16.mxu0 %v4800_v32 }
 0x1e5   : > { %3347 = vmatpush1.bf16.msra.mxu0 %v4798_v20 }
 0x21b   : > { %v2504_v61 = vpop.f32.mrb[32].mxu1 }
 0x21c   : > { %v4145_v26 = vadd.f32 %v2504_v61, %v6235_v36  ;;  %v2506_v1 = vpop.f32.mrb[33].mxu1 }
 0x21d   : > { %v4146_v28 = vadd.f32 %v2506_v1, %v6238_v42  ;;  %v2508_v51 = vpop.f32.mrb[34].mxu1 }
 0x21e   : > { %v2649_v14 = vmul.f32 0.2, %v4145_v26  ;;  %v4147_v19 = vadd.f32 %v2508_v51, %v6235_v36  ;;  %v2510_v8 = vpop.f32.mrb[35].mxu1  ;;  %vm2585_vm1 = vcmp.gt.f32.partialorder %v4145_v26, 0.0 }
 0x21f   : > { %v2650_v6 = vmul.f32 0.2, %v4146_v28  ;;  %v4148_v41 = vadd.f32 %v2510_v8, %v6238_v42  ;;  %vm2586_vm2 = vcmp.gt.f32.partialorder %v4146_v28, 0.0 }
 0x220   : > { %vm2589_vm3 = vcmp.gt.f32.partialorder %v4147_v19, 0.0  ;;  %v2653_v46 = vmul.f32 0.2, %v4147_v19  ;;  %v2713_v53 = vsel %vm2585_vm1, %v4145_v26, %v2649_v14 }
 0x221   : > { %vm2590_vm4 = vcmp.gt.f32.partialorder %v4148_v41, 0.0  ;;  %v2654_v13 = vmul.f32 0.2, %v4148_v41  ;;  %v2714_v24 = vsel %vm2586_vm2, %v4146_v28, %v2650_v6 }
 0x222   : > { %v2717_v48 = vsel %vm2589_vm3, %v4147_v19, %v2653_v46 }
 0x223   : > { %v2777_v62 = vpack.c.bf16 %v2717_v48, %v2713_v53  ;;  %v2514_v21 = vpop.f32.mrb[36].mxu1  ;;  %v2718_v39 = vsel %vm2590_vm4, %v4148_v41, %v2654_v13 }
 0x224   : > { %v4149_v57 = vadd.f32 %v2514_v21, %v6235_v36  ;;  %v2516_v31 = vpop.f32.mrb[37].mxu1  ;;  %v2778_v45 = vpack.c.bf16 %v2718_v39, %v2714_v24 }
 0x225   : > { %v4150_v60 = vadd.f32 %v2516_v31, %v6238_v42  ;;  %v2518_v52 = vpop.f32.mrb[38].mxu1 }
 0x226   : > { %v2657_v0 = vmul.f32 0.2, %v4149_v57  ;;  %v4151_v3 = vadd.f32 %v2518_v52, %v6235_v36  ;;  %v2520_v55 = vpop.f32.mrb[39].mxu1  ;;  %3348 = vmatprep.mubr.bf16.mxu0 %v2778_v45  ;;  %vm2593_vm5 = vcmp.gt.f32.partialorder %v4149_v57, 0.0 }
 0x227   : > { %v2658_v44 = vmul.f32 0.2, %v4150_v60  ;;  %v4152_v63 = vadd.f32 %v2520_v55, %v6238_v42  ;;  %3349 = vmatmul.mubr.bf16.vlgmr.msra.gmra.mrb[32].mxu0 %v2777_v62  ;;  %vm2594_vm6 = vcmp.gt.f32.partialorder %v4150_v60, 0.0 }
 0x228   : > { %vm2597_vm7 = vcmp.gt.f32.partialorder %v4151_v3, 0.0  ;;  %v2661_v15 = vmul.f32 0.2, %v4151_v3  ;;  %v2721_v4 = vsel %vm2593_vm5, %v4149_v57, %v2657_v0 }
 0x229   : > { %vm2598_vm8 = vcmp.gt.f32.partialorder %v4152_v63, 0.0  ;;  %v2662_v11 = vmul.f32 0.2, %v4152_v63  ;;  %v2722_v9 = vsel %vm2594_vm6, %v4150_v60, %v2658_v44 }
 0x22a   : > { %v2725_v18 = vsel %vm2597_vm7, %v4151_v3, %v2661_v15 }
 0x22b   : > { %v2524_v5 = vpop.f32.mrb[40].mxu1  ;;  %v2726_v25 = vsel %vm2598_vm8, %v4152_v63, %v2662_v11  ;;  %v2781_v33 = vpack.c.bf16 %v2725_v18, %v2721_v4 }
 0x22c   : > { %v4153_v16 = vadd.f32 %v2524_v5, %v6235_v36  ;;  %v2526_v10 = vpop.f32.mrb[41].mxu1  ;;  %v2782_v50 = vpack.c.bf16 %v2726_v25, %v2722_v9 }
 0x22d   : > { %v4154_v56 = vadd.f32 %v2526_v10, %v6238_v42  ;;  %v2528_v34 = vpop.f32.mrb[42].mxu1 }
 0x22e   : > { %v2665_v54 = vmul.f32 0.2, %v4153_v16  ;;  %v4155_v47 = vadd.f32 %v2528_v34, %v6235_v36  ;;  %v2530_v23 = vpop.f32.mrb[43].mxu1  ;;  %3358 = vmatprep.mubr.bf16.mxu0 %v2782_v50  ;;  %vm2601_vm9 = vcmp.gt.f32.partialorder %v4153_v16, 0.0 }
 0x22f   : > { %v2666_v49 = vmul.f32 0.2, %v4154_v56  ;;  %v4156_v29 = vadd.f32 %v2530_v23, %v6238_v42  ;;  %3359 = vmatmul.mubr.bf16.gmra.mrb[36].mxu0 %v2781_v33  ;;  %vm2602_vm10 = vcmp.gt.f32.partialorder %v4154_v56, 0.0 }
 0x230   : > { %vm2605_vm11 = vcmp.gt.f32.partialorder %v4155_v47, 0.0  ;;  %v2669_v58 = vmul.f32 0.2, %v4155_v47  ;;  %v2729_v27 = vsel %vm2601_vm9, %v4153_v16, %v2665_v54 }
 0x231   : > { %vm2606_vm12 = vcmp.gt.f32.partialorder %v4156_v29, 0.0  ;;  %v2670_v17 = vmul.f32 0.2, %v4156_v29  ;;  %v2730_v35 = vsel %vm2602_vm10, %v4154_v56, %v2666_v49 }
 0x232   : > { %v2733_v38 = vsel %vm2605_vm11, %v4155_v47, %v2669_v58 }
 0x233   : > { %v2534_v12 = vpop.f32.mrb[44].mxu1  ;;  %v2734_v40 = vsel %vm2606_vm12, %v4156_v29, %v2670_v17  ;;  %v2785_v43 = vpack.c.bf16 %v2733_v38, %v2729_v27 }
 0x234   : > { %v4157_v7 = vadd.f32 %v2534_v12, %v6235_v36  ;;  %v2536_v59 = vpop.f32.mrb[45].mxu1  ;;  %v2786_v32 = vpack.c.bf16 %v2734_v40, %v2730_v35 }
 0x235   : > { %v4158_v20 = vadd.f32 %v2536_v59, %v6238_v42  ;;  %v2538_v2 = vpop.f32.mrb[46].mxu1 }
 0x236   : > { %v2673_v22 = vmul.f32 0.2, %v4157_v7  ;;  %v4159_v61 = vadd.f32 %v2538_v2, %v6235_v36  ;;  %v2540_v26 = vpop.f32.mrb[47].mxu1  ;;  %3368 = vmatprep.mubr.bf16.mxu0 %v2786_v32  ;;  %vm2609_vm13 = vcmp.gt.f32.partialorder %v4157_v7, 0.0 }
 0x237   : > { %v2674_v1 = vmul.f32 0.2, %v4158_v20  ;;  %v4160_v28 = vadd.f32 %v2540_v26, %v6238_v42  ;;  %3369 = vmatmul.mubr.bf16.gmra.mrb[40].mxu0 %v2785_v43  ;;  %vm2610_vm14 = vcmp.gt.f32.partialorder %v4158_v20, 0.0 }
 0x238   : > { %vm2613_vm15 = vcmp.gt.f32.partialorder %v4159_v61, 0.0  ;;  %v2677_v51 = vmul.f32 0.2, %v4159_v61  ;;  %v2737_v19 = vsel %vm2609_vm13, %v4157_v7, %v2673_v22 }
 0x239   : > { %vm2614_vm0 = vcmp.gt.f32.partialorder %v4160_v28, 0.0  ;;  %v2678_v14 = vmul.f32 0.2, %v4160_v28  ;;  %v2738_v41 = vsel %vm2610_vm14, %v4158_v20, %v2674_v1 }
 0x23a   : > { %v2741_v8 = vsel %vm2613_vm15, %v4159_v61, %v2677_v51 }
 0x23b   : > { %v2544_v6 = vpop.f32.mrb[48].mxu1  ;;  %v2742_v46 = vsel %vm2614_vm0, %v4160_v28, %v2678_v14  ;;  %v2789_v13 = vpack.c.bf16 %v2741_v8, %v2737_v19 }
 0x23c   : > { %v4161_v53 = vadd.f32 %v2544_v6, %v6235_v36  ;;  %v2546_v48 = vpop.f32.mrb[49].mxu1  ;;  %v2790_v62 = vpack.c.bf16 %v2742_v46, %v2738_v41 }
 0x23d   : > { %v4162_v21 = vadd.f32 %v2546_v48, %v6238_v42  ;;  %v2548_v24 = vpop.f32.mrb[50].mxu1 }
 0x23e   : > { %v2681_v39 = vmul.f32 0.2, %v4161_v53  ;;  %v4163_v57 = vadd.f32 %v2548_v24, %v6235_v36  ;;  %v2550_v31 = vpop.f32.mrb[51].mxu1  ;;  %3378 = vmatprep.mubr.bf16.mxu0 %v2790_v62  ;;  %vm2617_vm1 = vcmp.gt.f32.partialorder %v4161_v53, 0.0 }
 0x23f   : > { %v2682_v45 = vmul.f32 0.2, %v4162_v21  ;;  %v4164_v60 = vadd.f32 %v2550_v31, %v6238_v42  ;;  %3379 = vmatmul.mubr.bf16.gmra.mrb[44].mxu0 %v2789_v13  ;;  %vm2618_vm2 = vcmp.gt.f32.partialorder %v4162_v21, 0.0 }
 0x240   : > { %vm2621_vm3 = vcmp.gt.f32.partialorder %v4163_v57, 0.0  ;;  %v2685_v52 = vmul.f32 0.2, %v4163_v57  ;;  %v2745_v3 = vsel %vm2617_vm1, %v4161_v53, %v2681_v39 }
 0x241   : > { %vm2622_vm4 = vcmp.gt.f32.partialorder %v4164_v60, 0.0  ;;  %v2686_v0 = vmul.f32 0.2, %v4164_v60  ;;  %v2746_v63 = vsel %vm2618_vm2, %v4162_v21, %v2682_v45 }
 0x242   : > { %v2749_v55 = vsel %vm2621_vm3, %v4163_v57, %v2685_v52 }
 0x243   : > { %v2554_v44 = vpop.f32.mrb[52].mxu1  ;;  %v2750_v15 = vsel %vm2622_vm4, %v4164_v60, %v2686_v0  ;;  %v2793_v11 = vpack.c.bf16 %v2749_v55, %v2745_v3  ;;  %v3525_v55 = vld [vmem:[%s6418_s5] sm:$0x3] }
 0x244   : > { %v4165_v4 = vadd.f32 %v2554_v44, %v6235_v36  ;;  %v2556_v18 = vpop.f32.mrb[53].mxu1  ;;  %v2794_v5 = vpack.c.bf16 %v2750_v15, %v2746_v63 }
 0x245   : > { %v4166_v9 = vadd.f32 %v2556_v18, %v6238_v42  ;;  %v2558_v25 = vpop.f32.mrb[54].mxu1  ;;  %v6287_v18 = vrot.slane %v3525_v55, %v6057_v37 }
 0x246   : > { %v2689_v33 = vmul.f32 0.2, %v4165_v4  ;;  %v4167_v16 = vadd.f32 %v2558_v25, %v6235_v36  ;;  %v2560_v10 = vpop.f32.mrb[55].mxu1  ;;  %3388 = vmatprep.mubr.bf16.mxu0 %v2794_v5  ;;  %vm2625_vm5 = vcmp.gt.f32.partialorder %v4165_v4, 0.0 }
 0x247   : > { %v2690_v50 = vmul.f32 0.2, %v4166_v9  ;;  %v4168_v56 = vadd.f32 %v2560_v10, %v6238_v42  ;;  %3389 = vmatmul.mubr.bf16.gmra.mrb[48].mxu0 %v2793_v11  ;;  %vm2626_vm6 = vcmp.gt.f32.partialorder %v4166_v9, 0.0 }
 0x248   : > { %vm2629_vm7 = vcmp.gt.f32.partialorder %v4167_v16, 0.0  ;;  %v2693_v34 = vmul.f32 0.2, %v4167_v16  ;;  %v2753_v47 = vsel %vm2625_vm5, %v4165_v4, %v2689_v33  ;;  %v6291_v33 = vrot.slane %v3525_v55, %v6065_v30 }
 0x249   : > { %vm2630_vm8 = vcmp.gt.f32.partialorder %v4168_v56, 0.0  ;;  %v2694_v54 = vmul.f32 0.2, %v4168_v56  ;;  %v2754_v29 = vsel %vm2626_vm6, %v4166_v9, %v2690_v50 }
 0x24a   : > { %v2757_v23 = vsel %vm2629_vm7, %v4167_v16, %v2693_v34 }
 0x24b   : > { %v2564_v49 = vpop.f32.mrb[56].mxu1  ;;  %v2758_v58 = vsel %vm2630_vm8, %v4168_v56, %v2694_v54  ;;  %v2797_v17 = vpack.c.bf16 %v2757_v23, %v2753_v47 }
 0x24c   : > { %v4169_v27 = vadd.f32 %v2564_v49, %v6235_v36  ;;  %v2566_v38 = vpop.f32.mrb[57].mxu1  ;;  %v2798_v12 = vpack.c.bf16 %v2758_v58, %v2754_v29 }
 0x24d   : > { %v4170_v35 = vadd.f32 %v2566_v38, %v6238_v42  ;;  %v2568_v40 = vpop.f32.mrb[58].mxu1 }
 0x24e   : > { %v2697_v43 = vmul.f32 0.2, %v4169_v27  ;;  %v4171_v7 = vadd.f32 %v2568_v40, %v6235_v36  ;;  %v2570_v59 = vpop.f32.mrb[59].mxu1  ;;  %3398 = vmatprep.mubr.bf16.mxu0 %v2798_v12  ;;  %vm2633_vm9 = vcmp.gt.f32.partialorder %v4169_v27, 0.0 }
 0x24f   : > { %v2698_v32 = vmul.f32 0.2, %v4170_v35  ;;  %v4172_v20 = vadd.f32 %v2570_v59, %v6238_v42  ;;  %3399 = vmatmul.mubr.bf16.gmra.mrb[52].mxu0 %v2797_v17  ;;  %vm2634_vm10 = vcmp.gt.f32.partialorder %v4170_v35, 0.0 }
 0x250   : > { %vm2637_vm11 = vcmp.gt.f32.partialorder %v4171_v7, 0.0  ;;  %v2701_v2 = vmul.f32 0.2, %v4171_v7  ;;  %v2761_v61 = vsel %vm2633_vm9, %v4169_v27, %v2697_v43 }
 0x251   : > { %vm2638_vm12 = vcmp.gt.f32.partialorder %v4172_v20, 0.0  ;;  %v2702_v22 = vmul.f32 0.2, %v4172_v20  ;;  %v2762_v28 = vsel %vm2634_vm10, %v4170_v35, %v2698_v32 }
 0x252   : > { %v2765_v26 = vsel %vm2637_vm11, %v4171_v7, %v2701_v2 }
 0x253   : > { %v2574_v1 = vpop.f32.mrb[60].mxu1  ;;  %v2766_v51 = vsel %vm2638_vm12, %v4172_v20, %v2702_v22  ;;  %v2801_v14 = vpack.c.bf16 %v2765_v26, %v2761_v61 }
 0x254   : > { %v4173_v19 = vadd.f32 %v2574_v1, %v6235_v36  ;;  %v2576_v8 = vpop.f32.mrb[61].mxu1  ;;  %v2802_v6 = vpack.c.bf16 %v2766_v51, %v2762_v28 }
 0x255   : > { %v4174_v41 = vadd.f32 %v2576_v8, %v6238_v42  ;;  %v2578_v46 = vpop.f32.mrb[62].mxu1 }
 0x256   : > { %v2705_v13 = vmul.f32 0.2, %v4173_v19  ;;  %v4175_v53 = vadd.f32 %v2578_v46, %v6235_v36  ;;  %v2580_v48 = vpop.f32.mrb[63].mxu1  ;;  %3408 = vmatprep.mubr.bf16.mxu0 %v2802_v6  ;;  %vm2641_vm13 = vcmp.gt.f32.partialorder %v4173_v19, 0.0  ;;  %v2871_v36 = vld [vmem:[%s6417_s4] sm:$0x3] }
 0x257   : > { %v2706_v62 = vmul.f32 0.2, %v4174_v41  ;;  %v4176_v21 = vadd.f32 %v2580_v48, %v6238_v42  ;;  %3409 = vmatmul.mubr.bf16.gmra.mrb[56].mxu0 %v2801_v14  ;;  %vm2642_vm14 = vcmp.gt.f32.partialorder %v4174_v41, 0.0  ;;  %v6276_v42 = vrot.slane %v2871_v36, %v6057_v37 }
 0x258   : > { %vm2645_vm15 = vcmp.gt.f32.partialorder %v4175_v53, 0.0  ;;  %v2709_v24 = vmul.f32 0.2, %v4175_v53  ;;  %v2769_v57 = vsel %vm2641_vm13, %v4173_v19, %v2705_v13  ;;  %v6279_v3 = vrot.slane %v2871_v36, %v6065_v30 }
 0x259   : > { %vm2646_vm0 = vcmp.gt.f32.partialorder %v4176_v21, 0.0  ;;  %v2710_v39 = vmul.f32 0.2, %v4176_v21  ;;  %v2770_v45 = vsel %vm2642_vm14, %v4174_v41, %v2706_v62 }
 0x25a   : > { %v2773_v31 = vsel %vm2645_vm15, %v4175_v53, %v2709_v24 }
 0x25b   : > { %v2774_v60 = vsel %vm2646_vm0, %v4176_v21, %v2710_v39  ;;  %v2805_v52 = vpack.c.bf16 %v2773_v31, %v2769_v57 }
 0x25c   : > { %v2806_v0 = vpack.c.bf16 %v2774_v60, %v2770_v45 }
 0x25e   : > { %3418 = vmatprep.mubr.bf16.mxu0 %v2806_v0 }
 0x25f   : > { %3419 = vmatmul.mubr.bf16.gmra.mrb[60].mxu0 %v2805_v52 }
 0x2fa   : > { %v3350_v44 = vpop.f32.mrb[32].mxu0 }
 0x2fb   : > { %v4177_v63 = vadd.f32 %v3350_v44, %v6276_v42  ;;  %v3352_v15 = vpop.f32.mrb[33].mxu0 }
 0x2fc   : > { %v4178_v11 = vadd.f32 %v3352_v15, %v6279_v3  ;;  %v3354_v4 = vpop.f32.mrb[34].mxu0 }
 0x2fd   : > { %vm3429_vm1 = vcmp.gt.f32.partialorder %v4177_v63, 0.0  ;;  %v3461_v5 = vmul.f32 0.2, %v4177_v63  ;;  %v4179_v9 = vadd.f32 %v3354_v4, %v6276_v42  ;;  %v3356_v25 = vpop.f32.mrb[35].mxu0 }
 0x2fe   : > { %vm3430_vm2 = vcmp.gt.f32.partialorder %v4178_v11, 0.0  ;;  %v3462_v16 = vmul.f32 0.2, %v4178_v11  ;;  %v4180_v10 = vadd.f32 %v3356_v25, %v6279_v3 }
 0x2ff   : > { %vm3431_vm3 = vcmp.gt.f32.partialorder %v4179_v9, 0.0  ;;  %v3463_v50 = vmul.f32 0.2, %v4179_v9  ;;  %v3493_v56 = vsel %vm3429_vm1, %v4177_v63, %v3461_v5 }
 0x300   : > { %vm3432_vm4 = vcmp.gt.f32.partialorder %v4180_v10, 0.0  ;;  %v3464_v34 = vmul.f32 0.2, %v4180_v10  ;;  %v3494_v54 = vsel %vm3430_vm2, %v4178_v11, %v3462_v16  ;;  %v3537_v37 = vmul.f32 %v6287_v18, %v3493_v56 }
 0x301   : > { %v3538_v47 = vmul.f32 %v6291_v33, %v3494_v54  ;;  %v3495_v23 = vsel %vm3431_vm3, %v4179_v9, %v3463_v50 }
 0x302   : > { %v3360_v49 = vpop.f32.mrb[36].mxu0  ;;  %v3496_v29 = vsel %vm3432_vm4, %v4180_v10, %v3464_v34  ;;  %v3539_v30 = vmul.f32 %v6287_v18, %v3495_v23 }
 0x303   : > { %v4181_v58 = vadd.f32 %v3360_v49, %v6276_v42  ;;  %v3362_v17 = vpop.f32.mrb[37].mxu0  ;;  %v3569_v27 = vadd.f32 %v3538_v47, %v3537_v37  ;;  %v3540_v38 = vmul.f32 %v6291_v33, %v3496_v29 }
 0x304   : > { %v4182_v12 = vadd.f32 %v3362_v17, %v6279_v3  ;;  %v3364_v35 = vpop.f32.mrb[38].mxu0 }
 0x305   : > { %vm3433_vm5 = vcmp.gt.f32.partialorder %v4181_v58, 0.0  ;;  %v3465_v40 = vmul.f32 0.2, %v4181_v58  ;;  %v4183_v43 = vadd.f32 %v3364_v35, %v6276_v42  ;;  %v3366_v7 = vpop.f32.mrb[39].mxu0  ;;  %3570 = vadd.xlane.f32.xlu0 %v3569_v27  ;;  %v3572_v59 = vadd.f32 %v3540_v38, %v3539_v30 }
 0x306   : > { %vm3434_vm6 = vcmp.gt.f32.partialorder %v4182_v12, 0.0  ;;  %v3466_v32 = vmul.f32 0.2, %v4182_v12  ;;  %v4184_v20 = vadd.f32 %v3366_v7, %v6279_v3 }
 0x307   : > { %vm3435_vm7 = vcmp.gt.f32.partialorder %v4183_v43, 0.0  ;;  %v3467_v2 = vmul.f32 0.2, %v4183_v43  ;;  %v3497_v22 = vsel %vm3433_vm5, %v4181_v58, %v3465_v40 }
 0x308   : > { %vm3436_vm8 = vcmp.gt.f32.partialorder %v4184_v20, 0.0  ;;  %v3468_v61 = vmul.f32 0.2, %v4184_v20  ;;  %v3498_v26 = vsel %vm3434_vm6, %v4182_v12, %v3466_v32  ;;  %v3541_v1 = vmul.f32 %v6287_v18, %v3497_v22 }
 0x309   : > { %3573 = vadd.xlane.f32.xlu0 %v3572_v59  ;;  %v3542_v28 = vmul.f32 %v6291_v33, %v3498_v26  ;;  %v3499_v51 = vsel %vm3435_vm7, %v4183_v43, %v3467_v2 }
 0x30a   : > { %v3370_v14 = vpop.f32.mrb[40].mxu0  ;;  %v3500_v19 = vsel %vm3436_vm8, %v4184_v20, %v3468_v61  ;;  %v3543_v8 = vmul.f32 %v6287_v18, %v3499_v51 }
 0x30b   : > { %v4185_v6 = vadd.f32 %v3370_v14, %v6276_v42  ;;  %v3372_v41 = vpop.f32.mrb[41].mxu0  ;;  %v3575_v46 = vadd.f32 %v3542_v28, %v3541_v1  ;;  %v3544_v13 = vmul.f32 %v6291_v33, %v3500_v19 }
 0x30c   : > { %v4186_v53 = vadd.f32 %v3372_v41, %v6279_v3  ;;  %v3374_v48 = vpop.f32.mrb[42].mxu0 }
 0x30d   : > { %vm3437_vm9 = vcmp.gt.f32.partialorder %v4185_v6, 0.0  ;;  %v3469_v62 = vmul.f32 0.2, %v4185_v6  ;;  %v4187_v21 = vadd.f32 %v3374_v48, %v6276_v42  ;;  %v3376_v24 = vpop.f32.mrb[43].mxu0  ;;  %3576 = vadd.xlane.f32.xlu1 %v3575_v46  ;;  %v3578_v39 = vadd.f32 %v3544_v13, %v3543_v8 }
 0x30e   : > { %vm3438_vm10 = vcmp.gt.f32.partialorder %v4186_v53, 0.0  ;;  %v3470_v57 = vmul.f32 0.2, %v4186_v53  ;;  %v4188_v31 = vadd.f32 %v3376_v24, %v6279_v3 }
 0x30f   : > { %vm3439_vm11 = vcmp.gt.f32.partialorder %v4187_v21, 0.0  ;;  %v3471_v45 = vmul.f32 0.2, %v4187_v21  ;;  %v3501_v60 = vsel %vm3437_vm9, %v4185_v6, %v3469_v62 }
 0x310   : > { %vm3440_vm12 = vcmp.gt.f32.partialorder %v4188_v31, 0.0  ;;  %v3472_v52 = vmul.f32 0.2, %v4188_v31  ;;  %v3502_v0 = vsel %vm3438_vm10, %v4186_v53, %v3470_v57  ;;  %v3545_v36 = vmul.f32 %v6287_v18, %v3501_v60 }
 0x311   : > { %3579 = vadd.xlane.f32.xlu1 %v3578_v39  ;;  %v3546_v55 = vmul.f32 %v6291_v33, %v3502_v0  ;;  %v3503_v44 = vsel %vm3439_vm11, %v4187_v21, %v3471_v45 }
 0x312   : > { %v3380_v63 = vpop.f32.mrb[44].mxu0  ;;  %v3504_v15 = vsel %vm3440_vm12, %v4188_v31, %v3472_v52  ;;  %v3547_v11 = vmul.f32 %v6287_v18, %v3503_v44 }
 0x313   : > { %v4189_v4 = vadd.f32 %v3380_v63, %v6276_v42  ;;  %v3382_v5 = vpop.f32.mrb[45].mxu0  ;;  %v3581_v9 = vadd.f32 %v3546_v55, %v3545_v36  ;;  %v3548_v25 = vmul.f32 %v6291_v33, %v3504_v15 }
 0x314   : > { %v4190_v16 = vadd.f32 %v3382_v5, %v6279_v3  ;;  %v3384_v10 = vpop.f32.mrb[46].mxu0 }
 0x315   : > { %vm3441_vm13 = vcmp.gt.f32.partialorder %v4189_v4, 0.0  ;;  %v3473_v50 = vmul.f32 0.2, %v4189_v4  ;;  %v4191_v56 = vadd.f32 %v3384_v10, %v6276_v42  ;;  %v3386_v34 = vpop.f32.mrb[47].mxu0  ;;  %3582 = vadd.xlane.f32.xlu0 %v3581_v9  ;;  %v3584_v54 = vadd.f32 %v3548_v25, %v3547_v11 }
 0x316   : > { %vm3442_vm14 = vcmp.gt.f32.partialorder %v4190_v16, 0.0  ;;  %v3474_v37 = vmul.f32 0.2, %v4190_v16  ;;  %v4192_v47 = vadd.f32 %v3386_v34, %v6279_v3 }
 0x317   : > { %vm3443_vm15 = vcmp.gt.f32.partialorder %v4191_v56, 0.0  ;;  %v3475_v23 = vmul.f32 0.2, %v4191_v56  ;;  %3585 = vadd.xlane.f32.xlu1 %v3584_v54  ;;  %v3505_v49 = vsel %vm3441_vm13, %v4189_v4, %v3473_v50 }
 0x318   : > { %vm3444_vm0 = vcmp.gt.f32.partialorder %v4192_v47, 0.0  ;;  %v3476_v29 = vmul.f32 0.2, %v4192_v47  ;;  %v3506_v30 = vsel %vm3442_vm14, %v4190_v16, %v3474_v37  ;;  %v3549_v58 = vmul.f32 %v6287_v18, %v3505_v49 }
 0x319   : > { %v3550_v17 = vmul.f32 %v6291_v33, %v3506_v30  ;;  %v3507_v27 = vsel %vm3443_vm15, %v4191_v56, %v3475_v23 }
 0x31a   : > { %v3390_v38 = vpop.f32.mrb[48].mxu0  ;;  %v3508_v12 = vsel %vm3444_vm0, %v4192_v47, %v3476_v29  ;;  %v3551_v35 = vmul.f32 %v6287_v18, %v3507_v27 }
 0x31b   : > { %v4193_v40 = vadd.f32 %v3390_v38, %v6276_v42  ;;  %v3392_v43 = vpop.f32.mrb[49].mxu0  ;;  %v3587_v7 = vadd.f32 %v3550_v17, %v3549_v58  ;;  %v3552_v59 = vmul.f32 %v6291_v33, %v3508_v12 }
 0x31c   : > { %v4194_v32 = vadd.f32 %v3392_v43, %v6279_v3  ;;  %v3394_v20 = vpop.f32.mrb[50].mxu0 }
 0x31d   : > { %vm3445_vm1 = vcmp.gt.f32.partialorder %v4193_v40, 0.0  ;;  %v3477_v2 = vmul.f32 0.2, %v4193_v40  ;;  %v4195_v22 = vadd.f32 %v3394_v20, %v6276_v42  ;;  %v3396_v61 = vpop.f32.mrb[51].mxu0  ;;  %3588 = vadd.xlane.f32.xlu0 %v3587_v7  ;;  %v3590_v26 = vadd.f32 %v3552_v59, %v3551_v35 }
 0x31e   : > { %vm3446_vm2 = vcmp.gt.f32.partialorder %v4194_v32, 0.0  ;;  %v3478_v1 = vmul.f32 0.2, %v4194_v32  ;;  %v4196_v28 = vadd.f32 %v3396_v61, %v6279_v3 }
 0x31f   : > { %vm3447_vm3 = vcmp.gt.f32.partialorder %v4195_v22, 0.0  ;;  %v3479_v51 = vmul.f32 0.2, %v4195_v22  ;;  %3591 = vadd.xlane.f32.xlu1 %v3590_v26  ;;  %v3509_v14 = vsel %vm3445_vm1, %v4193_v40, %v3477_v2  ;;  %vm3720_vm1 = vcmask 7168  }
 0x320   : > { %vm3448_vm4 = vcmp.gt.f32.partialorder %v4196_v28, 0.0  ;;  %v3480_v19 = vmul.f32 0.2, %v4196_v28  ;;  %v3510_v8 = vsel %vm3446_vm2, %v4194_v32, %v3478_v1  ;;  %v3553_v6 = vmul.f32 %v6287_v18, %v3509_v14 }
 0x321   : > { %v3554_v41 = vmul.f32 %v6291_v33, %v3510_v8  ;;  %v3511_v46 = vsel %vm3447_vm3, %v4195_v22, %v3479_v51 }
 0x322   : > { %v3400_v13 = vpop.f32.mrb[52].mxu0  ;;  %v3512_v53 = vsel %vm3448_vm4, %v4196_v28, %v3480_v19  ;;  %v3555_v48 = vmul.f32 %v6287_v18, %v3511_v46 }
 0x323   : > { %v4197_v62 = vadd.f32 %v3400_v13, %v6276_v42  ;;  %v3402_v21 = vpop.f32.mrb[53].mxu0  ;;  %v3593_v24 = vadd.f32 %v3554_v41, %v3553_v6  ;;  %v3556_v39 = vmul.f32 %v6291_v33, %v3512_v53 }
 0x324   : > { %v4198_v57 = vadd.f32 %v3402_v21, %v6279_v3  ;;  %v3404_v31 = vpop.f32.mrb[54].mxu0 }
 0x325   : > { %vm3449_vm5 = vcmp.gt.f32.partialorder %v4197_v62, 0.0  ;;  %v3481_v45 = vmul.f32 0.2, %v4197_v62  ;;  %v4199_v60 = vadd.f32 %v3404_v31, %v6276_v42  ;;  %v3406_v52 = vpop.f32.mrb[55].mxu0  ;;  %3594 = vadd.xlane.f32.xlu0 %v3593_v24  ;;  %v3596_v0 = vadd.f32 %v3556_v39, %v3555_v48 }
 0x326   : > { %vm3450_vm6 = vcmp.gt.f32.partialorder %v4198_v57, 0.0  ;;  %v3482_v36 = vmul.f32 0.2, %v4198_v57  ;;  %v4200_v55 = vadd.f32 %v3406_v52, %v6279_v3 }
 0x327   : > { %vm3451_vm7 = vcmp.gt.f32.partialorder %v4199_v60, 0.0  ;;  %v3483_v44 = vmul.f32 0.2, %v4199_v60  ;;  %3597 = vadd.xlane.f32.xlu1 %v3596_v0  ;;  %v3513_v63 = vsel %vm3449_vm5, %v4197_v62, %v3481_v45  ;;  %v6354_v45 = vld [vmem:[#allocation2] ss:$0 sm:$0xff] }
 0x328   : > { %vm3452_vm8 = vcmp.gt.f32.partialorder %v4200_v55, 0.0  ;;  %v3484_v15 = vmul.f32 0.2, %v4200_v55  ;;  %v3514_v11 = vsel %vm3450_vm6, %v4198_v57, %v3482_v36  ;;  %v3557_v4 = vmul.f32 %v6287_v18, %v3513_v63 }
 0x329   : > { %v3558_v5 = vmul.f32 %v6291_v33, %v3514_v11  ;;  %v3515_v9 = vsel %vm3451_vm7, %v4199_v60, %v3483_v44 }
 0x32a   : > { %v3410_v25 = vpop.f32.mrb[56].mxu0  ;;  %v3516_v16 = vsel %vm3452_vm8, %v4200_v55, %v3484_v15  ;;  %v3559_v10 = vmul.f32 %v6287_v18, %v3515_v9 }
 0x32b   : > { %v4201_v50 = vadd.f32 %v3410_v25, %v6276_v42  ;;  %v3412_v56 = vpop.f32.mrb[57].mxu0  ;;  %v3599_v34 = vadd.f32 %v3558_v5, %v3557_v4  ;;  %v3560_v54 = vmul.f32 %v6291_v33, %v3516_v16 }
 0x32c   : > { %v4202_v37 = vadd.f32 %v3412_v56, %v6279_v3  ;;  %v3414_v47 = vpop.f32.mrb[58].mxu0 }
 0x32d   : > { %vm3453_vm9 = vcmp.gt.f32.partialorder %v4201_v50, 0.0  ;;  %v3485_v23 = vmul.f32 0.2, %v4201_v50  ;;  %v4203_v49 = vadd.f32 %v3414_v47, %v6276_v42  ;;  %v3416_v29 = vpop.f32.mrb[59].mxu0  ;;  %3600 = vadd.xlane.f32.xlu0 %v3599_v34  ;;  %v3602_v30 = vadd.f32 %v3560_v54, %v3559_v10 }
 0x32e   : > { %vm3454_vm10 = vcmp.gt.f32.partialorder %v4202_v37, 0.0  ;;  %v3486_v58 = vmul.f32 0.2, %v4202_v37  ;;  %v4204_v17 = vadd.f32 %v3416_v29, %v6279_v3 }
 0x32f   : > { %vm3455_vm11 = vcmp.gt.f32.partialorder %v4203_v49, 0.0  ;;  %v3487_v27 = vmul.f32 0.2, %v4203_v49  ;;  %3603 = vadd.xlane.f32.xlu1 %v3602_v30  ;;  %v3517_v38 = vsel %vm3453_vm9, %v4201_v50, %v3485_v23 }
 0x330   : > { %vm3456_vm12 = vcmp.gt.f32.partialorder %v4204_v17, 0.0  ;;  %v3488_v12 = vmul.f32 0.2, %v4204_v17  ;;  %v3518_v35 = vsel %vm3454_vm10, %v4202_v37, %v3486_v58  ;;  %v3561_v40 = vmul.f32 %v6287_v18, %v3517_v38 }
 0x331   : > { %v3562_v43 = vmul.f32 %v6291_v33, %v3518_v35  ;;  %v3519_v7 = vsel %vm3455_vm11, %v4203_v49, %v3487_v27 }
 0x332   : > { %v3420_v59 = vpop.f32.mrb[60].mxu0  ;;  %v3520_v32 = vsel %vm3456_vm12, %v4204_v17, %v3488_v12  ;;  %v3563_v20 = vmul.f32 %v6287_v18, %v3519_v7 }
 0x333   : > { %v4205_v2 = vadd.f32 %v3420_v59, %v6276_v42  ;;  %v3422_v22 = vpop.f32.mrb[61].mxu0  ;;  %v3605_v61 = vadd.f32 %v3562_v43, %v3561_v40  ;;  %v3564_v26 = vmul.f32 %v6291_v33, %v3520_v32 }
 0x334   : > { %v4206_v1 = vadd.f32 %v3422_v22, %v6279_v3  ;;  %v3424_v28 = vpop.f32.mrb[62].mxu0 }
 0x335   : > { %vm3457_vm13 = vcmp.gt.f32.partialorder %v4205_v2, 0.0  ;;  %v3489_v51 = vmul.f32 0.2, %v4205_v2  ;;  %v4207_v14 = vadd.f32 %v3424_v28, %v6276_v42  ;;  %v3426_v19 = vpop.f32.mrb[63].mxu0  ;;  %3606 = vadd.xlane.f32.xlu0 %v3605_v61  ;;  %v3608_v8 = vadd.f32 %v3564_v26, %v3563_v20 }
 0x336   : > { %vm3458_vm14 = vcmp.gt.f32.partialorder %v4206_v1, 0.0  ;;  %v3490_v6 = vmul.f32 0.2, %v4206_v1  ;;  %v4208_v41 = vadd.f32 %v3426_v19, %v6279_v3 }
 0x337   : > { %vm3459_vm15 = vcmp.gt.f32.partialorder %v4207_v14, 0.0  ;;  %v3491_v46 = vmul.f32 0.2, %v4207_v14  ;;  %3609 = vadd.xlane.f32.xlu1 %v3608_v8  ;;  %v3521_v13 = vsel %vm3457_vm13, %v4205_v2, %v3489_v51 }
 0x338   : > { %vm3460_vm0 = vcmp.gt.f32.partialorder %v4208_v41, 0.0  ;;  %v3492_v53 = vmul.f32 0.2, %v4208_v41  ;;  %v3522_v48 = vsel %vm3458_vm14, %v4206_v1, %v3490_v6  ;;  %v3565_v62 = vmul.f32 %v6287_v18, %v3521_v13 }
 0x339   : > { %v3566_v21 = vmul.f32 %v6291_v33, %v3522_v48  ;;  %v3523_v24 = vsel %vm3459_vm15, %v4207_v14, %v3491_v46 }
 0x33a   : > { %v3524_v42 = vsel %vm3460_vm0, %v4208_v41, %v3492_v53  ;;  %v3567_v39 = vmul.f32 %v6287_v18, %v3523_v24 }
 0x33b   : > { %v3611_v57 = vadd.f32 %v3566_v21, %v3565_v62  ;;  %v3568_v31 = vmul.f32 %v6291_v33, %v3524_v42 }
 0x33d   : > { %3612 = vadd.xlane.f32.xlu0 %v3611_v57  ;;  %v3614_v3 = vadd.f32 %v3568_v31, %v3567_v39 }
 0x33f   : > { %3615 = vadd.xlane.f32.xlu1 %v3614_v3 }
 0x392   : > { %v3571_v60 = vpop.xlane.xlu0 %3570 }
 0x393   : > { %v3624_v52 = vadd.f32 %v6354_v45, %v3571_v60 }
 0x395   : > { %v3640_v0 = vsub.f32 0.0, %v3624_v52 }
 0x396   : > { %v3574_v36 = vpop.xlane.xlu0 %3573 }
 0x397   : > { %v3656_v55 = vmul.f32 1.442695, %v3640_v0  ;;  %v3625_v44 = vadd.f32 %v6354_v45, %v3574_v36 }
 0x399   : > { %4801 = vpow2.f32 %v3656_v55  ;;  %v3641_v63 = vsub.f32 0.0, %v3625_v44 }
 0x39a   : > { %v3577_v15 = vpop.xlane.xlu1 %3576 }
 0x39b   : > { %v3658_v18 = vmul.f32 1.442695, %v3641_v63  ;;  %v3626_v11 = vadd.f32 %v6354_v45, %v3577_v15 }
 0x39d   : > { %4803 = vpow2.f32 %v3658_v18  ;;  %v3642_v33 = vsub.f32 0.0, %v3626_v11 }
 0x39e   : > { %v3580_v4 = vpop.xlane.xlu1 %3579 }
 0x39f   : > { %v3660_v5 = vmul.f32 1.442695, %v3642_v33  ;;  %v3627_v9 = vadd.f32 %v6354_v45, %v3580_v4 }
 0x3a1   : > { %4805 = vpow2.f32 %v3660_v5  ;;  %v3643_v25 = vsub.f32 0.0, %v3627_v9 }
 0x3a2   : > { %v3583_v16 = vpop.xlane.xlu0 %3582 }
 0x3a3   : > { %v4802_v10 = vpop.eup %4801  ;;  %v3662_v50 = vmul.f32 1.442695, %v3643_v25  ;;  %v3628_v56 = vadd.f32 %v6354_v45, %v3583_v16 }
 0x3a4   : > { %v3688_v34 = vadd.f32 1.0, %v4802_v10  ;;  %v3586_v54 = vpop.xlane.xlu1 %3585 }
 0x3a5   : > { %4807 = vpow2.f32 %v3662_v50  ;;  %v3644_v37 = vsub.f32 0.0, %v3628_v56  ;;  %v3629_v47 = vadd.f32 %v6354_v45, %v3586_v54 }
 0x3a6   : > { %4809 = vrcp.f32 %v3688_v34 }
 0x3a7   : > { %v4804_v23 = vpop.eup %4803  ;;  %v3664_v49 = vmul.f32 1.442695, %v3644_v37  ;;  %v3645_v29 = vsub.f32 0.0, %v3629_v47 }
 0x3a8   : > { %v3689_v30 = vadd.f32 1.0, %v4804_v23 }
 0x3a9   : > { %4811 = vpow2.f32 %v3664_v49  ;;  %v3666_v58 = vmul.f32 1.442695, %v3645_v29 }
 0x3aa   : > { %4813 = vrcp.f32 %v3689_v30  ;;  %v3589_v17 = vpop.xlane.xlu0 %3588 }
 0x3ab   : > { %v4806_v27 = vpop.eup %4805  ;;  %4815 = vpow2.f32 %v3666_v58  ;;  %v3630_v38 = vadd.f32 %v6354_v45, %v3589_v17 }
 0x3ac   : > { %v3690_v12 = vadd.f32 1.0, %v4806_v27  ;;  %v3592_v35 = vpop.xlane.xlu1 %3591 }
 0x3ad   : > { %v3646_v40 = vsub.f32 0.0, %v3630_v38  ;;  %v3631_v43 = vadd.f32 %v6354_v45, %v3592_v35 }
 0x3ae   : > { %4817 = vrcp.f32 %v3690_v12 }
 0x3af   : > { %v4808_v7 = vpop.eup %4807  ;;  %v3668_v59 = vmul.f32 1.442695, %v3646_v40  ;;  %v3647_v32 = vsub.f32 0.0, %v3631_v43 }
 0x3b0   : > { %v4810_v20 = vpop.eup %4809  ;;  %v3691_v2 = vadd.f32 1.0, %v4808_v7 }
 0x3b1   : > { %3721 = vst.msk [vmem:[%s6368_s24] sm:$0xff] %vm3720_vm1, %v4810_v20  ;;  %4819 = vpow2.f32 %v3668_v59  ;;  %v3670_v22 = vmul.f32 1.442695, %v3647_v32 }
 0x3b2   : > { %4821 = vrcp.f32 %v3691_v2  ;;  %v3595_v61 = vpop.xlane.xlu0 %3594 }
 0x3b3   : > { %v4812_v26 = vpop.eup %4811  ;;  %4823 = vpow2.f32 %v3670_v22  ;;  %v3632_v1 = vadd.f32 %v6354_v45, %v3595_v61 }
 0x3b4   : > { %v4814_v28 = vpop.eup %4813  ;;  %v3692_v51 = vadd.f32 1.0, %v4812_v26  ;;  %v3598_v14 = vpop.xlane.xlu1 %3597 }
 0x3b5   : > { %v4816_v19 = vpop.eup %4815  ;;  %3722 = vst.msk [vmem:[%s6368_s24 + $0x8] sm:$0xff] %vm3720_vm1, %v4814_v28  ;;  %v3648_v8 = vsub.f32 0.0, %v3632_v1  ;;  %v3633_v6 = vadd.f32 %v6354_v45, %v3598_v14 }
 0x3b6   : > { %4825 = vrcp.f32 %v3692_v51  ;;  %v3693_v41 = vadd.f32 1.0, %v4816_v19 }
 0x3b7   : > { %v3672_v46 = vmul.f32 1.442695, %v3648_v8  ;;  %v3649_v13 = vsub.f32 0.0, %v3633_v6 }
 0x3b8   : > { %v4818_v53 = vpop.eup %4817  ;;  %4827 = vrcp.f32 %v3693_v41 }
 0x3b9   : > { %3723 = vst.msk [vmem:[%s6368_s24 + $0x10] sm:$0xff] %vm3720_vm1, %v4818_v53  ;;  %4829 = vpow2.f32 %v3672_v46  ;;  %v3674_v48 = vmul.f32 1.442695, %v3649_v13 }
 0x3ba   : > { %v3601_v62 = vpop.xlane.xlu0 %3600 }
 0x3bb   : > { %v4820_v21 = vpop.eup %4819  ;;  %4831 = vpow2.f32 %v3674_v48  ;;  %v3634_v24 = vadd.f32 %v6354_v45, %v3601_v62 }
 0x3bc   : > { %v4822_v42 = vpop.eup %4821  ;;  %v3694_v39 = vadd.f32 1.0, %v4820_v21  ;;  %v3604_v57 = vpop.xlane.xlu1 %3603 }
 0x3bd   : > { %v4824_v31 = vpop.eup %4823  ;;  %3724 = vst.msk [vmem:[%s6368_s24 + $0x18] sm:$0xff] %vm3720_vm1, %v4822_v42  ;;  %v3650_v3 = vsub.f32 0.0, %v3634_v24  ;;  %v3635_v60 = vadd.f32 %v6354_v45, %v3604_v57 }
 0x3be   : > { %4833 = vrcp.f32 %v3694_v39  ;;  %v3695_v52 = vadd.f32 1.0, %v4824_v31 }
 0x3bf   : > { %v3676_v0 = vmul.f32 1.442695, %v3650_v3  ;;  %v3651_v36 = vsub.f32 0.0, %v3635_v60 }
 0x3c0   : > { %v4826_v55 = vpop.eup %4825  ;;  %4835 = vrcp.f32 %v3695_v52 }
 0x3c1   : > { %3725 = vst.msk [vmem:[%s6368_s24 + $0x20] sm:$0xff] %vm3720_vm1, %v4826_v55  ;;  %4837 = vpow2.f32 %v3676_v0  ;;  %v3678_v44 = vmul.f32 1.442695, %v3651_v36 }
 0x3c2   : > { %v4828_v63 = vpop.eup %4827  ;;  %v3607_v15 = vpop.xlane.xlu0 %3606 }
 0x3c3   : > { %v4830_v18 = vpop.eup %4829  ;;  %3726 = vst.msk [vmem:[%s6368_s24 + $0x28] sm:$0xff] %vm3720_vm1, %v4828_v63  ;;  %4839 = vpow2.f32 %v3678_v44  ;;  %v3636_v11 = vadd.f32 %v6354_v45, %v3607_v15 }
 0x3c4   : > { %v3696_v33 = vadd.f32 1.0, %v4830_v18  ;;  %v3610_v4 = vpop.xlane.xlu1 %3609 }
 0x3c5   : > { %v4832_v5 = vpop.eup %4831  ;;  %v3652_v9 = vsub.f32 0.0, %v3636_v11  ;;  %v3637_v25 = vadd.f32 %v6354_v45, %v3610_v4 }
 0x3c6   : > { %4841 = vrcp.f32 %v3696_v33  ;;  %v3697_v16 = vadd.f32 1.0, %v4832_v5 }
 0x3c7   : > { %v3680_v10 = vmul.f32 1.442695, %v3652_v9  ;;  %v3653_v50 = vsub.f32 0.0, %v3637_v25 }
 0x3c8   : > { %v4834_v56 = vpop.eup %4833  ;;  %4843 = vrcp.f32 %v3697_v16 }
 0x3c9   : > { %3727 = vst.msk [vmem:[%s6368_s24 + $0x30] sm:$0xff] %vm3720_vm1, %v4834_v56  ;;  %4845 = vpow2.f32 %v3680_v10  ;;  %v3682_v34 = vmul.f32 1.442695, %v3653_v50 }
 0x3ca   : > { %v4836_v54 = vpop.eup %4835  ;;  %v3613_v37 = vpop.xlane.xlu0 %3612 }
 0x3cb   : > { %v4838_v47 = vpop.eup %4837  ;;  %3728 = vst.msk [vmem:[%s6368_s24 + $0x38] sm:$0xff] %vm3720_vm1, %v4836_v54  ;;  %4847 = vpow2.f32 %v3682_v34  ;;  %v3638_v23 = vadd.f32 %v6354_v45, %v3613_v37 }
 0x3cc   : > { %v3698_v49 = vadd.f32 1.0, %v4838_v47  ;;  %v3616_v29 = vpop.xlane.xlu1 %3615 }
 0x3cd   : > { %v4840_v30 = vpop.eup %4839  ;;  %v3654_v58 = vsub.f32 0.0, %v3638_v23  ;;  %v3639_v17 = vadd.f32 %v6354_v45, %v3616_v29 }
 0x3ce   : > { %4849 = vrcp.f32 %v3698_v49  ;;  %v3699_v27 = vadd.f32 1.0, %v4840_v30 }
 0x3cf   : > { %v3684_v38 = vmul.f32 1.442695, %v3654_v58  ;;  %v3655_v12 = vsub.f32 0.0, %v3639_v17 }
 0x3d0   : > { %v4842_v35 = vpop.eup %4841  ;;  %4851 = vrcp.f32 %v3699_v27 }
 0x3d1   : > { %3729 = vst.msk [vmem:[%s6368_s24 + $0x40] sm:$0xff] %vm3720_vm1, %v4842_v35  ;;  %4853 = vpow2.f32 %v3684_v38  ;;  %v3686_v40 = vmul.f32 1.442695, %v3655_v12 }
 0x3d2   : > { %v4844_v43 = vpop.eup %4843 }
 0x3d3   : > { %v4846_v7 = vpop.eup %4845  ;;  %3730 = vst.msk [vmem:[%s6368_s24 + $0x48] sm:$0xff] %vm3720_vm1, %v4844_v43  ;;  %4855 = vpow2.f32 %v3686_v40 }
 0x3d4   : > { %v3700_v59 = vadd.f32 1.0, %v4846_v7 }
 0x3d5   : > { %v4848_v45 = vpop.eup %4847 }
 0x3d6   : > { %4857 = vrcp.f32 %v3700_v59  ;;  %v3701_v32 = vadd.f32 1.0, %v4848_v45 }
 0x3d8   : > { %v4850_v20 = vpop.eup %4849  ;;  %4859 = vrcp.f32 %v3701_v32 }
 0x3d9   : > { %3731 = vst.msk [vmem:[%s6368_s24 + $0x50] sm:$0xff] %vm3720_vm1, %v4850_v20 }
 0x3da   : > { %v4852_v2 = vpop.eup %4851 }
 0x3db   : > { %v4854_v22 = vpop.eup %4853  ;;  %3732 = vst.msk [vmem:[%s6368_s24 + $0x58] sm:$0xff] %vm3720_vm1, %v4852_v2 }
 0x3dc   : > { %v3702_v61 = vadd.f32 1.0, %v4854_v22 }
 0x3dd   : > { %v4856_v26 = vpop.eup %4855 }
 0x3de   : > { %4861 = vrcp.f32 %v3702_v61  ;;  %v3703_v1 = vadd.f32 1.0, %v4856_v26 }
 0x3e0   : > { %v4858_v28 = vpop.eup %4857  ;;  %4863 = vrcp.f32 %v3703_v1 }
 0x3e1   : > { %3733 = vst.msk [vmem:[%s6368_s24 + $0x60] sm:$0xff] %vm3720_vm1, %v4858_v28 }
 0x3e2   : > { %v4860_v51 = vpop.eup %4859 }
 0x3e3   : > { %3734 = vst.msk [vmem:[%s6368_s24 + $0x68] sm:$0xff] %vm3720_vm1, %v4860_v51 }
 0x3e8   : > { %v4862_v14 = vpop.eup %4861 }
 0x3e9   : > { %3735 = vst.msk [vmem:[%s6368_s24 + $0x70] sm:$0xff] %vm3720_vm1, %v4862_v14 }
 0x3ea   : > { %v4864_v19 = vpop.eup %4863 }
 0x3eb   : > { %3736 = vst.msk [vmem:[%s6368_s24 + $0x78] sm:$0xff] %vm3720_vm1, %v4864_v19 }
 0x3ec PF: > { %s19_s26 = sadd.s32 1, %s4871_s26  }
 0x3ed   : > { %p16_p4 = scmp.ge.s32.totalorder %s19_s26, 4  }
 0x3ef   :  { %18 = sbr.rel (!%p16_p4) target bundleno = 3 (0x3), region = 78 }

</bundles_post_ra>
